<compile_context>
chip_gen: v6e
topology: v6e:2x2x1
jax: 0.10.0
libtpu: 0.0.40
codegen_flags: <defaults>
</compile_context>

<pallas_src>
import functools

import jax
import jax.numpy as jnp
from jax.experimental import pallas as pl
from jax.experimental.pallas import tpu as pltpu

E_LAMBDA = 1e-4
BN_EPS = 1e-5


# ---------------------------------------------------------------------------
# Fused kernel: 1x1 conv (BN-folded) + bias + SiLU + SimAM (4 quadrants)
# ---------------------------------------------------------------------------
def _conv_sws_kernel(x_ref, w_ref, b_ref, mt_ref, ml_ref, o_ref, *,
                     inv_n, inv_s, use_mxu):
    # x_ref : [bt, C1, S]   bf16, S = H*W (row-major flattened image)
    # w_ref : [TC2, C1]     bf16, BN scale folded in
    # b_ref : [TC2, 1]      f32 folded BN bias
    # mt_ref: [1, S]        1.0 where pixel is in the TOP half
    # ml_ref: [1, S]        1.0 where pixel is in the LEFT half
    # o_ref : [bt, TC2, S]
    bt, c1, _s = x_ref.shape

    mt = mt_ref[...]                       # [1, S]
    ml = ml_ref[...]                       # [1, S]
    mtl = mt * ml                          # [1, S] top-left quadrant
    top_b = mt > 0.5                       # boolean masks for the blends
    lft_b = ml > 0.5
    bias = b_ref[...]                      # [TC2, 1]

    if not use_mxu:
        wf = w_ref[...].astype(jnp.float32)   # hoisted out of the image loop

    for b in range(bt):                    # bt is small and static (<= 8)
        # ---- 1x1 conv (+ folded BN bias) ----
        if use_mxu:
            y = jnp.dot(w_ref[...], x_ref[b],
                        preferred_element_type=jnp.float32)          # [TC2, S]
        else:
            # K = C1 <= 8: MXU would be <5% utilized -> C1 broadcast FMAs on VPU
            xf = x_ref[b].astype(jnp.float32)                         # [C1, S]
            y = wf[:, 0:1] * xf[0:1, :]
            for c in range(1, c1):
                y = y + wf[:, c:c + 1] * xf[c:c + 1, :]
        y = y + bias
        y = y * jax.nn.sigmoid(y)                                     # SiLU

        # ---- SimAM over the 4 quadrants ----
        # quadrant sums via unmasked + 3 masked reductions, derived by subtraction
        s_all = jnp.sum(y, axis=-1, keepdims=True)                    # [TC2, 1]
        s_top = jnp.sum(y * mt, axis=-1, keepdims=True)
        s_lft = jnp.sum(y * ml, axis=-1, keepdims=True)
        s_tl = jnp.sum(y * mtl, axis=-1, keepdims=True)
        mu_tl = s_tl * inv_s
        mu_tr = (s_top - s_tl) * inv_s
        mu_bl = (s_lft - s_tl) * inv_s
        mu_br = (s_all - s_top - s_lft + s_tl) * inv_s
        mu = jnp.where(top_b, jnp.where(lft_b, mu_tl, mu_tr),
                       jnp.where(lft_b, mu_bl, mu_br))                # [TC2, S]

        # shifted two-pass variance: no catastrophic cancellation
        d = y - mu
        d2 = d * d
        q_all = jnp.sum(d2, axis=-1, keepdims=True)
        q_top = jnp.sum(d2 * mt, axis=-1, keepdims=True)
        q_lft = jnp.sum(d2 * ml, axis=-1, keepdims=True)
        q_tl = jnp.sum(d2 * mtl, axis=-1, keepdims=True)
        iv_tl = pl.reciprocal(4.0 * (q_tl * inv_n + E_LAMBDA), approx=True)
        iv_tr = pl.reciprocal(4.0 * ((q_top - q_tl) * inv_n + E_LAMBDA), approx=True)
        iv_bl = pl.reciprocal(4.0 * ((q_lft - q_tl) * inv_n + E_LAMBDA), approx=True)
        iv_br = pl.reciprocal(
            4.0 * ((q_all - q_top - q_lft + q_tl) * inv_n + E_LAMBDA), approx=True)
        iv = jnp.where(top_b, jnp.where(lft_b, iv_tl, iv_tr),
                       jnp.where(lft_b, iv_bl, iv_br))                # [TC2, S]

        att = d2 * iv + 0.5
        o_ref[b] = (y * jax.nn.sigmoid(att)).astype(o_ref.dtype)


# ---------------------------------------------------------------------------
# Full Conv_SWS forward
# ---------------------------------------------------------------------------
def conv_sws_forward(x_nchw, conv_w, bn_gamma, bn_beta, bn_mean, bn_var, *,
                     out_dtype=jnp.float32, force_tc2=None, force_bt=None):
    """x_nchw: [B, C1, H, W]; conv_w: [C2, C1] (1x1 kernel); BN params: [C2]."""
    b, c1, h, w = x_nchw.shape
    c2 = conv_w.shape[0]
    assert h % 2 == 0 and w % 2 == 0, "SimAMWithSlicing needs even H and W"
    s = h * w
    s_quad = (h // 2) * (w // 2)

    # ---- fold inference BatchNorm exactly into the 1x1 conv weight / bias ----
    inv_std = 1.0 / jnp.sqrt(bn_var.astype(jnp.float32) + BN_EPS)
    scale = bn_gamma.astype(jnp.float32) * inv_std                       # [C2]
    w_folded = (conv_w.astype(jnp.float32) * scale[:, None]).astype(jnp.bfloat16)
    bias = (bn_beta.astype(jnp.float32)
            - bn_mean.astype(jnp.float32) * scale)[:, None]              # [C2, 1] f32

    # bf16 activations halve HBM read traffic (kernel is HBM-bound).
    # NCHW -> [B, C1, H*W] is a free contiguous reshape.
    x_flat = x_nchw.reshape(b, c1, s).astype(jnp.bfloat16)

    # quadrant masks for one row-major flattened H*W image (f32, [1, S])
    left = jnp.tile((jnp.arange(w) < (w // 2)).astype(jnp.float32), h).reshape(1, s)
    top = (jnp.arange(s) < (h // 2) * w).astype(jnp.float32).reshape(1, s)

    # ---- generation-aware VMEM budgeting & tile selection ----
    try:
        vmem_cap = int(pltpu.get_tpu_info().vmem_capacity_bytes)
        if vmem_cap <= 0:
            raise ValueError("bad vmem capacity")
    except Exception:
        vmem_cap = 64 << 20            # conservative (v7x per-TensorCore)
    budget = (vmem_cap * 7) // 10      # ~30% headroom for compiler scratch etc.

    x_img = c1 * s * x_flat.dtype.itemsize
    o_per_ch = s * jnp.dtype(out_dtype).itemsize

    def blk_bytes(bt_, tc2_):          # double-buffered in + out data blocks
        return 2 * bt_ * (x_img + tc2_ * o_per_ch)

    # C2 tile: shrink by powers of two (staying a multiple of 8) until one
    # double-buffered per-image block fits in half the budget.
    tc2 = c2
    while tc2 > 8 and tc2 % 16 == 0 and blk_bytes(1, tc2) > budget // 2:
        tc2 //= 2
    if force_tc2 is not None:
        tc2 = int(force_tc2)
    assert c2 % tc2 == 0 and (tc2 == c2 or tc2 % 8 == 0), "tc2 must keep sublane tiling"
    # TODO(synk): for C1*S blocks beyond VMEM, add an 'arbitrary' C1 grid axis with
    #             a f32 VMEM accumulator (K tiles of 256 to match v6e/v7x MXUs).

    # batch fold: put several images in one grid step so each step DMAs as much
    # as comfortably fits (per-step pipeline overhead ~0.35us).
    bt = 1
    for cand in range(min(b, 8), 0, -1):
        if b % cand == 0 and blk_bytes(cand, tc2) <= budget // 2:
            bt = cand
            break
    if force_bt is not None:
        assert b % int(force_bt) == 0
        bt = int(force_bt)

    n_c2 = c2 // tc2
    params_invariant = (n_c2 == 1)     # weight/bias block index never changes

    # VMEM request: data blocks (2x buffered) + params (count 2x to be safe) + margin
    param_bytes = tc2 * c1 * 2 + tc2 * 4 + 2 * s * 4
    vmem_limit = blk_bytes(bt, tc2) + 2 * param_bytes + (2 << 20)
    vmem_limit = int(min(max(vmem_limit, 8 << 20), budget))

    kernel = functools.partial(
        _conv_sws_kernel,
        inv_n=1.0 / float(s_quad - 1),
        inv_s=1.0 / float(s_quad),
        use_mxu=c1 > 8,                # tiny K would leave the MXU <5% utilized
    )

    def build(single_buffer_invariants):
        def spec(shape, index_map, invariant):
            if invariant and single_buffer_invariants:
                return pl.BlockSpec(shape, index_map, pipeline_mode=pl.Buffered(1))
            return pl.BlockSpec(shape, index_map)

        grid_spec = pltpu.PrefetchScalarGridSpec(
            num_scalar_prefetch=0,
            grid=(b // bt, n_c2),      # c2 tiles innermost: x block reused across them
            in_specs=[
                pl.BlockSpec((bt, c1, s), lambda i, j: (i, 0, 0)),
                spec((tc2, c1), lambda i, j: (j, 0), params_invariant),
                spec((tc2, 1), lambda i, j: (j, 0), params_invariant),
                spec((1, s), lambda i, j: (0, 0), True),   # top mask (invariant)
                spec((1, s), lambda i, j: (0, 0), True),   # left mask (invariant)
            ],
            out_specs=pl.BlockSpec((bt, tc2, s), lambda i, j: (i, j, 0)),
        )
        return pl.pallas_call(
            kernel,
            out_shape=jax.ShapeDtypeStruct((b, c2, s), out_dtype),
            grid_spec=grid_spec,
            compiler_params=pltpu.CompilerParams(
                dimension_semantics=("parallel", "parallel"),
                vmem_limit_bytes=vmem_limit,
            ),
        )

    args = (x_flat, w_folded, bias, top, left)
    try:
        out_flat = build(True)(*args)
    except Exception:
        # pipeline_mode=pl.Buffered(1) not supported by this JAX build: the params
        # are small, so plain double-buffering is a safe fallback.
        out_flat = build(False)(*args)

    # free contiguous reshape back to NCHW
    return out_flat.reshape(b, c2, h, w)


# ---------------------------------------------------------------------------
# Pure-JAX reference: conv(1x1, BN folded) -> SiLU -> SimAMWithSlicing
# (BN folding into weight/bias is exact for inference BatchNorm.)
# ---------------------------------------------------------------------------
def reference_forward(x, w_folded, bias_vec):
    y = jnp.einsum("oc,bchw->bohw", w_folded, x) + bias_vec[None, :, None, None]
    y = y * jax.nn.sigmoid(y)
    _, _, h, w = y.shape
    bh, bw = h // 2, w // 2
    n = bh * bw - 1
    outs = []
    for blk in (y[:, :, :bh, :bw], y[:, :, :bh, bw:],
                y[:, :, bh:, :bw], y[:, :, bh:, bw:]):
        d2 = (blk - blk.mean(axis=(2, 3), keepdims=True)) ** 2
        att = d2 / (4.0 * (d2.sum(axis=(2, 3), keepdims=True) / n + E_LAMBDA)) + 0.5
        outs.append(blk * jax.nn.sigmoid(att))
    top = jnp.concatenate([outs[0], outs[1]], axis=3)
    bot = jnp.concatenate([outs[2], outs[3]], axis=3)
    return jnp.concatenate([top, bot], axis=2)


if __name__ == "__main__":
    key = jax.random.PRNGKey(0)

    def run_case(B, C1, C2, H, W, force_tc2=None):
        ks = jax.random.split(jax.random.fold_in(key, C1 * 1000 + C2), 6)
        x = jax.random.normal(ks[0], (B, C1, H, W), dtype=jnp.float32)
        conv_w = 0.1 * jax.random.normal(ks[1], (C2, C1), dtype=jnp.float32)
        g = 1.0 + 0.1 * jax.random.normal(ks[2], (C2,), dtype=jnp.float32)
        beta = 0.1 * jax.random.normal(ks[3], (C2,), dtype=jnp.float32)
        mean = 0.05 * jax.random.normal(ks[4], (C2,), dtype=jnp.float32)
        var = 1.0 + 0.2 * jax.random.uniform(ks[5], (C2,), dtype=jnp.float32)

        out = conv_sws_forward(x, conv_w, g, beta, mean, var, force_tc2=force_tc2)
        out = jax.block_until_ready(out)
        assert out.shape == (B, C2, H, W)

        # Reference on the SAME bf16-rounded operands the kernel consumes, so the
        # check isolates kernel math (bf16 I/O is the deliberate perf choice).
        inv_std = 1.0 / jnp.sqrt(var + BN_EPS)
        scale = g * inv_std
        w_folded = (conv_w * scale[:, None]).astype(jnp.bfloat16).astype(jnp.float32)
        bias_vec = beta - mean * scale
        x_bf = x.astype(jnp.bfloat16).astype(jnp.float32)
        ref = reference_forward(x_bf, w_folded, bias_vec)
        err = float(jnp.max(jnp.abs(out - ref)))
        assert err < 1e-2, f"max abs err {err}"  # covers the approx reciprocal
        return err

    run_case(2, 4, 8, 16, 16)                    # tiny-C1 VPU-FMA path (demo shape)
    run_case(2, 32, 32, 16, 16, force_tc2=16)    # MXU path + C2-tiled grid axis
    print("KERNEL_OK")
</pallas_src>

<mosaic_0001>
module attributes {stable_mosaic.version = 11 : i64} {
  func.func @_conv_sws_kernel(%arg0: i32, %arg1: i32, %arg2: memref<2x4x256xbf16, #tpu.memory_space<vmem>>, %arg3: memref<8x4xbf16, #tpu.memory_space<vmem>>, %arg4: memref<8x1xf32, #tpu.memory_space<vmem>>, %arg5: memref<1x256xf32, #tpu.memory_space<vmem>>, %arg6: memref<1x256xf32, #tpu.memory_space<vmem>>, %arg7: memref<2x8x256xf32, #tpu.memory_space<vmem>>) attributes {dimension_semantics = [#tpu.dimension_semantics<parallel>, #tpu.dimension_semantics<parallel>], iteration_bounds = array<i64: 1, 1>, scalar_prefetch = 0 : i64, scratch_operands = 0 : i64, tpu.core_type = #tpu.core_type<tc>, window_params = [{transform_indices = @transform_0, window_bounds = array<i64: 2, 4, 256>}, {pipeline_mode = #tpu.pipeline_mode<synchronous>, transform_indices = @transform_1, window_bounds = array<i64: 8, 4>}, {pipeline_mode = #tpu.pipeline_mode<synchronous>, transform_indices = @transform_2, window_bounds = array<i64: 8, 1>}, {pipeline_mode = #tpu.pipeline_mode<synchronous>, transform_indices = @transform_3, window_bounds = array<i64: 1, 256>}, {pipeline_mode = #tpu.pipeline_mode<synchronous>, transform_indices = @transform_4, window_bounds = array<i64: 1, 256>}, {transform_indices = @transform_5, window_bounds = array<i64: 2, 8, 256>}]} {
    %c0 = arith.constant 0 : index
    %c0_0 = arith.constant 0 : index
    %0 = vector.load %arg5[%c0, %c0_0] : memref<1x256xf32, #tpu.memory_space<vmem>>, vector<1x256xf32>
    %c0_1 = arith.constant 0 : index
    %c0_2 = arith.constant 0 : index
    %1 = vector.load %arg6[%c0_1, %c0_2] : memref<1x256xf32, #tpu.memory_space<vmem>>, vector<1x256xf32>
    %2 = arith.mulf %0, %1 : vector<1x256xf32>
    %cst = arith.constant 5.000000e-01 : f32
    %3 = vector.broadcast %cst : f32 to vector<1x256xf32>
    %4 = arith.cmpf ogt, %0, %3 : vector<1x256xf32>
    %cst_3 = arith.constant 5.000000e-01 : f32
    %5 = vector.broadcast %cst_3 : f32 to vector<1x256xf32>
    %6 = arith.cmpf ogt, %1, %5 : vector<1x256xf32>
    %c0_4 = arith.constant 0 : index
    %c0_5 = arith.constant 0 : index
    %7 = vector.load %arg4[%c0_4, %c0_5] : memref<8x1xf32, #tpu.memory_space<vmem>>, vector<8x1xf32>
    %c0_6 = arith.constant 0 : index
    %c0_7 = arith.constant 0 : index
    %8 = vector.load %arg3[%c0_6, %c0_7] : memref<8x4xbf16, #tpu.memory_space<vmem>>, vector<8x4xbf16>
    %9 = arith.extf %8 : vector<8x4xbf16> to vector<8x4xf32>
    %c0_8 = arith.constant 0 : index
    %c0_9 = arith.constant 0 : index
    %c0_10 = arith.constant 0 : index
    %10 = vector.load %arg2[%c0_8, %c0_9, %c0_10] : memref<2x4x256xbf16, #tpu.memory_space<vmem>>, vector<1x4x256xbf16>
    %11 = vector.shape_cast %10 : vector<1x4x256xbf16> to vector<4x256xbf16>
    %12 = arith.extf %11 : vector<4x256xbf16> to vector<4x256xf32>
    %13 = vector.extract_strided_slice %9 {offsets = [0, 0], sizes = [8, 1], strides = [1, 1]} : vector<8x4xf32> to vector<8x1xf32>
    %14 = vector.extract_strided_slice %12 {offsets = [0, 0], sizes = [1, 256], strides = [1, 1]} : vector<4x256xf32> to vector<1x256xf32>
    %15 = vector.broadcast %13 : vector<8x1xf32> to vector<8x256xf32>
    %16 = vector.broadcast %14 : vector<1x256xf32> to vector<8x256xf32>
    %17 = arith.mulf %15, %16 : vector<8x256xf32>
    %18 = vector.extract_strided_slice %9 {offsets = [0, 1], sizes = [8, 1], strides = [1, 1]} : vector<8x4xf32> to vector<8x1xf32>
    %19 = vector.extract_strided_slice %12 {offsets = [1, 0], sizes = [1, 256], strides = [1, 1]} : vector<4x256xf32> to vector<1x256xf32>
    %20 = vector.broadcast %18 : vector<8x1xf32> to vector<8x256xf32>
    %21 = vector.broadcast %19 : vector<1x256xf32> to vector<8x256xf32>
    %22 = arith.mulf %20, %21 : vector<8x256xf32>
    %23 = arith.addf %17, %22 : vector<8x256xf32>
    %24 = vector.extract_strided_slice %9 {offsets = [0, 2], sizes = [8, 1], strides = [1, 1]} : vector<8x4xf32> to vector<8x1xf32>
    %25 = vector.extract_strided_slice %12 {offsets = [2, 0], sizes = [1, 256], strides = [1, 1]} : vector<4x256xf32> to vector<1x256xf32>
    %26 = vector.broadcast %24 : vector<8x1xf32> to vector<8x256xf32>
    %27 = vector.broadcast %25 : vector<1x256xf32> to vector<8x256xf32>
    %28 = arith.mulf %26, %27 : vector<8x256xf32>
    %29 = arith.addf %23, %28 : vector<8x256xf32>
    %30 = vector.extract_strided_slice %9 {offsets = [0, 3], sizes = [8, 1], strides = [1, 1]} : vector<8x4xf32> to vector<8x1xf32>
    %31 = vector.extract_strided_slice %12 {offsets = [3, 0], sizes = [1, 256], strides = [1, 1]} : vector<4x256xf32> to vector<1x256xf32>
    %32 = vector.broadcast %30 : vector<8x1xf32> to vector<8x256xf32>
    %33 = vector.broadcast %31 : vector<1x256xf32> to vector<8x256xf32>
    %34 = arith.mulf %32, %33 : vector<8x256xf32>
    %35 = arith.addf %29, %34 : vector<8x256xf32>
    %36 = vector.broadcast %7 : vector<8x1xf32> to vector<8x256xf32>
    %37 = arith.addf %35, %36 : vector<8x256xf32>
    %38 = arith.negf %37 : vector<8x256xf32>
    %39 = math.exp %38 : vector<8x256xf32>
    %cst_11 = arith.constant 1.000000e+00 : f32
    %40 = vector.broadcast %cst_11 : f32 to vector<8x256xf32>
    %41 = arith.addf %40, %39 : vector<8x256xf32>
    %42 = arith.divf %40, %41 : vector<8x256xf32>
    %43 = arith.mulf %37, %42 : vector<8x256xf32>
    %cst_12 = arith.constant dense<0.000000e+00> : vector<8xf32>
    %44 = vector.multi_reduction <add>, %43, %cst_12 [1] : vector<8x256xf32> to vector<8xf32>
    %45 = vector.shape_cast %44 : vector<8xf32> to vector<8x1xf32>
    %46 = vector.broadcast %0 : vector<1x256xf32> to vector<8x256xf32>
    %47 = arith.mulf %43, %46 : vector<8x256xf32>
    %cst_13 = arith.constant dense<0.000000e+00> : vector<8xf32>
    %48 = vector.multi_reduction <add>, %47, %cst_13 [1] : vector<8x256xf32> to vector<8xf32>
    %49 = vector.shape_cast %48 : vector<8xf32> to vector<8x1xf32>
    %50 = vector.broadcast %1 : vector<1x256xf32> to vector<8x256xf32>
    %51 = arith.mulf %43, %50 : vector<8x256xf32>
    %cst_14 = arith.constant dense<0.000000e+00> : vector<8xf32>
    %52 = vector.multi_reduction <add>, %51, %cst_14 [1] : vector<8x256xf32> to vector<8xf32>
    %53 = vector.shape_cast %52 : vector<8xf32> to vector<8x1xf32>
    %54 = vector.broadcast %2 : vector<1x256xf32> to vector<8x256xf32>
    %55 = arith.mulf %43, %54 : vector<8x256xf32>
    %cst_15 = arith.constant dense<0.000000e+00> : vector<8xf32>
    %56 = vector.multi_reduction <add>, %55, %cst_15 [1] : vector<8x256xf32> to vector<8xf32>
    %57 = vector.shape_cast %56 : vector<8xf32> to vector<8x1xf32>
    %cst_16 = arith.constant 1.562500e-02 : f32
    %58 = vector.broadcast %cst_16 : f32 to vector<8x1xf32>
    %59 = arith.mulf %57, %58 : vector<8x1xf32>
    %60 = arith.subf %49, %57 : vector<8x1xf32>
    %cst_17 = arith.constant 1.562500e-02 : f32
    %61 = vector.broadcast %cst_17 : f32 to vector<8x1xf32>
    %62 = arith.mulf %60, %61 : vector<8x1xf32>
    %63 = arith.subf %53, %57 : vector<8x1xf32>
    %cst_18 = arith.constant 1.562500e-02 : f32
    %64 = vector.broadcast %cst_18 : f32 to vector<8x1xf32>
    %65 = arith.mulf %63, %64 : vector<8x1xf32>
    %66 = arith.subf %45, %49 : vector<8x1xf32>
    %67 = arith.subf %66, %53 : vector<8x1xf32>
    %68 = arith.addf %67, %57 : vector<8x1xf32>
    %cst_19 = arith.constant 1.562500e-02 : f32
    %69 = vector.broadcast %cst_19 : f32 to vector<8x1xf32>
    %70 = arith.mulf %68, %69 : vector<8x1xf32>
    %71 = vector.shape_cast %6 : vector<1x256xi1> to vector<1x256xi1>
    %72 = vector.broadcast %71 : vector<1x256xi1> to vector<8x256xi1>
    %73 = vector.shape_cast %59 : vector<8x1xf32> to vector<8x1xf32>
    %74 = vector.broadcast %73 : vector<8x1xf32> to vector<8x256xf32>
    %75 = vector.shape_cast %62 : vector<8x1xf32> to vector<8x1xf32>
    %76 = vector.broadcast %75 : vector<8x1xf32> to vector<8x256xf32>
    %77 = arith.select %72, %74, %76 : vector<8x256xi1>, vector<8x256xf32>
    %78 = vector.shape_cast %6 : vector<1x256xi1> to vector<1x256xi1>
    %79 = vector.broadcast %78 : vector<1x256xi1> to vector<8x256xi1>
    %80 = vector.shape_cast %65 : vector<8x1xf32> to vector<8x1xf32>
    %81 = vector.broadcast %80 : vector<8x1xf32> to vector<8x256xf32>
    %82 = vector.shape_cast %70 : vector<8x1xf32> to vector<8x1xf32>
    %83 = vector.broadcast %82 : vector<8x1xf32> to vector<8x256xf32>
    %84 = arith.select %79, %81, %83 : vector<8x256xi1>, vector<8x256xf32>
    %85 = vector.shape_cast %4 : vector<1x256xi1> to vector<1x256xi1>
    %86 = vector.broadcast %85 : vector<1x256xi1> to vector<8x256xi1>
    %87 = arith.select %86, %77, %84 : vector<8x256xi1>, vector<8x256xf32>
    %88 = arith.subf %43, %87 : vector<8x256xf32>
    %89 = arith.mulf %88, %88 : vector<8x256xf32>
    %cst_20 = arith.constant dense<0.000000e+00> : vector<8xf32>
    %90 = vector.multi_reduction <add>, %89, %cst_20 [1] : vector<8x256xf32> to vector<8xf32>
    %91 = vector.shape_cast %90 : vector<8xf32> to vector<8x1xf32>
    %92 = vector.broadcast %0 : vector<1x256xf32> to vector<8x256xf32>
    %93 = arith.mulf %89, %92 : vector<8x256xf32>
    %cst_21 = arith.constant dense<0.000000e+00> : vector<8xf32>
    %94 = vector.multi_reduction <add>, %93, %cst_21 [1] : vector<8x256xf32> to vector<8xf32>
    %95 = vector.shape_cast %94 : vector<8xf32> to vector<8x1xf32>
    %96 = vector.broadcast %1 : vector<1x256xf32> to vector<8x256xf32>
    %97 = arith.mulf %89, %96 : vector<8x256xf32>
    %cst_22 = arith.constant dense<0.000000e+00> : vector<8xf32>
    %98 = vector.multi_reduction <add>, %97, %cst_22 [1] : vector<8x256xf32> to vector<8xf32>
    %99 = vector.shape_cast %98 : vector<8xf32> to vector<8x1xf32>
    %100 = vector.broadcast %2 : vector<1x256xf32> to vector<8x256xf32>
    %101 = arith.mulf %89, %100 : vector<8x256xf32>
    %cst_23 = arith.constant dense<0.000000e+00> : vector<8xf32>
    %102 = vector.multi_reduction <add>, %101, %cst_23 [1] : vector<8x256xf32> to vector<8xf32>
    %103 = vector.shape_cast %102 : vector<8xf32> to vector<8x1xf32>
    %cst_24 = arith.constant 0.0158730168 : f32
    %104 = vector.broadcast %cst_24 : f32 to vector<8x1xf32>
    %105 = arith.mulf %103, %104 : vector<8x1xf32>
    %cst_25 = arith.constant 9.99999974E-5 : f32
    %106 = vector.broadcast %cst_25 : f32 to vector<8x1xf32>
    %107 = arith.addf %105, %106 : vector<8x1xf32>
    %cst_26 = arith.constant 4.000000e+00 : f32
    %108 = vector.broadcast %cst_26 : f32 to vector<8x1xf32>
    %109 = arith.mulf %108, %107 : vector<8x1xf32>
    %110 = tpu.reciprocal %109 {approx = true} : vector<8x1xf32> -> vector<8x1xf32>
    %111 = arith.subf %95, %103 : vector<8x1xf32>
    %cst_27 = arith.constant 0.0158730168 : f32
    %112 = vector.broadcast %cst_27 : f32 to vector<8x1xf32>
    %113 = arith.mulf %111, %112 : vector<8x1xf32>
    %cst_28 = arith.constant 9.99999974E-5 : f32
    %114 = vector.broadcast %cst_28 : f32 to vector<8x1xf32>
    %115 = arith.addf %113, %114 : vector<8x1xf32>
    %cst_29 = arith.constant 4.000000e+00 : f32
    %116 = vector.broadcast %cst_29 : f32 to vector<8x1xf32>
    %117 = arith.mulf %116, %115 : vector<8x1xf32>
    %118 = tpu.reciprocal %117 {approx = true} : vector<8x1xf32> -> vector<8x1xf32>
    %119 = arith.subf %99, %103 : vector<8x1xf32>
    %cst_30 = arith.constant 0.0158730168 : f32
    %120 = vector.broadcast %cst_30 : f32 to vector<8x1xf32>
    %121 = arith.mulf %119, %120 : vector<8x1xf32>
    %cst_31 = arith.constant 9.99999974E-5 : f32
    %122 = vector.broadcast %cst_31 : f32 to vector<8x1xf32>
    %123 = arith.addf %121, %122 : vector<8x1xf32>
    %cst_32 = arith.constant 4.000000e+00 : f32
    %124 = vector.broadcast %cst_32 : f32 to vector<8x1xf32>
    %125 = arith.mulf %124, %123 : vector<8x1xf32>
    %126 = tpu.reciprocal %125 {approx = true} : vector<8x1xf32> -> vector<8x1xf32>
    %127 = arith.subf %91, %95 : vector<8x1xf32>
    %128 = arith.subf %127, %99 : vector<8x1xf32>
    %129 = arith.addf %128, %103 : vector<8x1xf32>
    %cst_33 = arith.constant 0.0158730168 : f32
    %130 = vector.broadcast %cst_33 : f32 to vector<8x1xf32>
    %131 = arith.mulf %129, %130 : vector<8x1xf32>
    %cst_34 = arith.constant 9.99999974E-5 : f32
    %132 = vector.broadcast %cst_34 : f32 to vector<8x1xf32>
    %133 = arith.addf %131, %132 : vector<8x1xf32>
    %cst_35 = arith.constant 4.000000e+00 : f32
    %134 = vector.broadcast %cst_35 : f32 to vector<8x1xf32>
    %135 = arith.mulf %134, %133 : vector<8x1xf32>
    %136 = tpu.reciprocal %135 {approx = true} : vector<8x1xf32> -> vector<8x1xf32>
    %137 = vector.shape_cast %6 : vector<1x256xi1> to vector<1x256xi1>
    %138 = vector.broadcast %137 : vector<1x256xi1> to vector<8x256xi1>
    %139 = vector.shape_cast %110 : vector<8x1xf32> to vector<8x1xf32>
    %140 = vector.broadcast %139 : vector<8x1xf32> to vector<8x256xf32>
    %141 = vector.shape_cast %118 : vector<8x1xf32> to vector<8x1xf32>
    %142 = vector.broadcast %141 : vector<8x1xf32> to vector<8x256xf32>
    %143 = arith.select %138, %140, %142 : vector<8x256xi1>, vector<8x256xf32>
    %144 = vector.shape_cast %6 : vector<1x256xi1> to vector<1x256xi1>
    %145 = vector.broadcast %144 : vector<1x256xi1> to vector<8x256xi1>
    %146 = vector.shape_cast %126 : vector<8x1xf32> to vector<8x1xf32>
    %147 = vector.broadcast %146 : vector<8x1xf32> to vector<8x256xf32>
    %148 = vector.shape_cast %136 : vector<8x1xf32> to vector<8x1xf32>
    %149 = vector.broadcast %148 : vector<8x1xf32> to vector<8x256xf32>
    %150 = arith.select %145, %147, %149 : vector<8x256xi1>, vector<8x256xf32>
    %151 = vector.shape_cast %4 : vector<1x256xi1> to vector<1x256xi1>
    %152 = vector.broadcast %151 : vector<1x256xi1> to vector<8x256xi1>
    %153 = arith.select %152, %143, %150 : vector<8x256xi1>, vector<8x256xf32>
    %154 = arith.mulf %89, %153 : vector<8x256xf32>
    %cst_36 = arith.constant 5.000000e-01 : f32
    %155 = vector.broadcast %cst_36 : f32 to vector<8x256xf32>
    %156 = arith.addf %154, %155 : vector<8x256xf32>
    %157 = arith.negf %156 : vector<8x256xf32>
    %158 = math.exp %157 : vector<8x256xf32>
    %cst_37 = arith.constant 1.000000e+00 : f32
    %159 = vector.broadcast %cst_37 : f32 to vector<8x256xf32>
    %160 = arith.addf %159, %158 : vector<8x256xf32>
    %161 = arith.divf %159, %160 : vector<8x256xf32>
    %162 = arith.mulf %43, %161 : vector<8x256xf32>
    %c0_38 = arith.constant 0 : index
    %c0_39 = arith.constant 0 : index
    %c0_40 = arith.constant 0 : index
    %163 = vector.load %arg7[%c0_38, %c0_39, %c0_40] : memref<2x8x256xf32, #tpu.memory_space<vmem>>, vector<1x8x256xf32>
    %164 = vector.shape_cast %163 : vector<1x8x256xf32> to vector<8x256xf32>
    %165 = vector.shape_cast %162 : vector<8x256xf32> to vector<1x8x256xf32>
    tpu.vector_store %arg7[%c0_38, %c0_39, %c0_40], %165 {strides = array<i32>} : memref<2x8x256xf32, #tpu.memory_space<vmem>>, vector<1x8x256xf32>,
    %c1 = arith.constant 1 : index
    %c0_41 = arith.constant 0 : index
    %c0_42 = arith.constant 0 : index
    %166 = vector.load %arg2[%c1, %c0_41, %c0_42] : memref<2x4x256xbf16, #tpu.memory_space<vmem>>, vector<1x4x256xbf16>
    %167 = vector.shape_cast %166 : vector<1x4x256xbf16> to vector<4x256xbf16>
    %168 = arith.extf %167 : vector<4x256xbf16> to vector<4x256xf32>
    %169 = vector.extract_strided_slice %9 {offsets = [0, 0], sizes = [8, 1], strides = [1, 1]} : vector<8x4xf32> to vector<8x1xf32>
    %170 = vector.extract_strided_slice %168 {offsets = [0, 0], sizes = [1, 256], strides = [1, 1]} : vector<4x256xf32> to vector<1x256xf32>
    %171 = vector.broadcast %169 : vector<8x1xf32> to vector<8x256xf32>
    %172 = vector.broadcast %170 : vector<1x256xf32> to vector<8x256xf32>
    %173 = arith.mulf %171, %172 : vector<8x256xf32>
    %174 = vector.extract_strided_slice %9 {offsets = [0, 1], sizes = [8, 1], strides = [1, 1]} : vector<8x4xf32> to vector<8x1xf32>
    %175 = vector.extract_strided_slice %168 {offsets = [1, 0], sizes = [1, 256], strides = [1, 1]} : vector<4x256xf32> to vector<1x256xf32>
    %176 = vector.broadcast %174 : vector<8x1xf32> to vector<8x256xf32>
    %177 = vector.broadcast %175 : vector<1x256xf32> to vector<8x256xf32>
    %178 = arith.mulf %176, %177 : vector<8x256xf32>
    %179 = arith.addf %173, %178 : vector<8x256xf32>
    %180 = vector.extract_strided_slice %9 {offsets = [0, 2], sizes = [8, 1], strides = [1, 1]} : vector<8x4xf32> to vector<8x1xf32>
    %181 = vector.extract_strided_slice %168 {offsets = [2, 0], sizes = [1, 256], strides = [1, 1]} : vector<4x256xf32> to vector<1x256xf32>
    %182 = vector.broadcast %180 : vector<8x1xf32> to vector<8x256xf32>
    %183 = vector.broadcast %181 : vector<1x256xf32> to vector<8x256xf32>
    %184 = arith.mulf %182, %183 : vector<8x256xf32>
    %185 = arith.addf %179, %184 : vector<8x256xf32>
    %186 = vector.extract_strided_slice %9 {offsets = [0, 3], sizes = [8, 1], strides = [1, 1]} : vector<8x4xf32> to vector<8x1xf32>
    %187 = vector.extract_strided_slice %168 {offsets = [3, 0], sizes = [1, 256], strides = [1, 1]} : vector<4x256xf32> to vector<1x256xf32>
    %188 = vector.broadcast %186 : vector<8x1xf32> to vector<8x256xf32>
    %189 = vector.broadcast %187 : vector<1x256xf32> to vector<8x256xf32>
    %190 = arith.mulf %188, %189 : vector<8x256xf32>
    %191 = arith.addf %185, %190 : vector<8x256xf32>
    %192 = vector.broadcast %7 : vector<8x1xf32> to vector<8x256xf32>
    %193 = arith.addf %191, %192 : vector<8x256xf32>
    %194 = arith.negf %193 : vector<8x256xf32>
    %195 = math.exp %194 : vector<8x256xf32>
    %cst_43 = arith.constant 1.000000e+00 : f32
    %196 = vector.broadcast %cst_43 : f32 to vector<8x256xf32>
    %197 = arith.addf %196, %195 : vector<8x256xf32>
    %198 = arith.divf %196, %197 : vector<8x256xf32>
    %199 = arith.mulf %193, %198 : vector<8x256xf32>
    %cst_44 = arith.constant dense<0.000000e+00> : vector<8xf32>
    %200 = vector.multi_reduction <add>, %199, %cst_44 [1] : vector<8x256xf32> to vector<8xf32>
    %201 = vector.shape_cast %200 : vector<8xf32> to vector<8x1xf32>
    %202 = vector.broadcast %0 : vector<1x256xf32> to vector<8x256xf32>
    %203 = arith.mulf %199, %202 : vector<8x256xf32>
    %cst_45 = arith.constant dense<0.000000e+00> : vector<8xf32>
    %204 = vector.multi_reduction <add>, %203, %cst_45 [1] : vector<8x256xf32> to vector<8xf32>
    %205 = vector.shape_cast %204 : vector<8xf32> to vector<8x1xf32>
    %206 = vector.broadcast %1 : vector<1x256xf32> to vector<8x256xf32>
    %207 = arith.mulf %199, %206 : vector<8x256xf32>
    %cst_46 = arith.constant dense<0.000000e+00> : vector<8xf32>
    %208 = vector.multi_reduction <add>, %207, %cst_46 [1] : vector<8x256xf32> to vector<8xf32>
    %209 = vector.shape_cast %208 : vector<8xf32> to vector<8x1xf32>
    %210 = vector.broadcast %2 : vector<1x256xf32> to vector<8x256xf32>
    %211 = arith.mulf %199, %210 : vector<8x256xf32>
    %cst_47 = arith.constant dense<0.000000e+00> : vector<8xf32>
    %212 = vector.multi_reduction <add>, %211, %cst_47 [1] : vector<8x256xf32> to vector<8xf32>
    %213 = vector.shape_cast %212 : vector<8xf32> to vector<8x1xf32>
    %cst_48 = arith.constant 1.562500e-02 : f32
    %214 = vector.broadcast %cst_48 : f32 to vector<8x1xf32>
    %215 = arith.mulf %213, %214 : vector<8x1xf32>
    %216 = arith.subf %205, %213 : vector<8x1xf32>
    %cst_49 = arith.constant 1.562500e-02 : f32
    %217 = vector.broadcast %cst_49 : f32 to vector<8x1xf32>
    %218 = arith.mulf %216, %217 : vector<8x1xf32>
    %219 = arith.subf %209, %213 : vector<8x1xf32>
    %cst_50 = arith.constant 1.562500e-02 : f32
    %220 = vector.broadcast %cst_50 : f32 to vector<8x1xf32>
    %221 = arith.mulf %219, %220 : vector<8x1xf32>
    %222 = arith.subf %201, %205 : vector<8x1xf32>
    %223 = arith.subf %222, %209 : vector<8x1xf32>
    %224 = arith.addf %223, %213 : vector<8x1xf32>
    %cst_51 = arith.constant 1.562500e-02 : f32
    %225 = vector.broadcast %cst_51 : f32 to vector<8x1xf32>
    %226 = arith.mulf %224, %225 : vector<8x1xf32>
    %227 = vector.shape_cast %6 : vector<1x256xi1> to vector<1x256xi1>
    %228 = vector.broadcast %227 : vector<1x256xi1> to vector<8x256xi1>
    %229 = vector.shape_cast %215 : vector<8x1xf32> to vector<8x1xf32>
    %230 = vector.broadcast %229 : vector<8x1xf32> to vector<8x256xf32>
    %231 = vector.shape_cast %218 : vector<8x1xf32> to vector<8x1xf32>
    %232 = vector.broadcast %231 : vector<8x1xf32> to vector<8x256xf32>
    %233 = arith.select %228, %230, %232 : vector<8x256xi1>, vector<8x256xf32>
    %234 = vector.shape_cast %6 : vector<1x256xi1> to vector<1x256xi1>
    %235 = vector.broadcast %234 : vector<1x256xi1> to vector<8x256xi1>
    %236 = vector.shape_cast %221 : vector<8x1xf32> to vector<8x1xf32>
    %237 = vector.broadcast %236 : vector<8x1xf32> to vector<8x256xf32>
    %238 = vector.shape_cast %226 : vector<8x1xf32> to vector<8x1xf32>
    %239 = vector.broadcast %238 : vector<8x1xf32> to vector<8x256xf32>
    %240 = arith.select %235, %237, %239 : vector<8x256xi1>, vector<8x256xf32>
    %241 = vector.shape_cast %4 : vector<1x256xi1> to vector<1x256xi1>
    %242 = vector.broadcast %241 : vector<1x256xi1> to vector<8x256xi1>
    %243 = arith.select %242, %233, %240 : vector<8x256xi1>, vector<8x256xf32>
    %244 = arith.subf %199, %243 : vector<8x256xf32>
    %245 = arith.mulf %244, %244 : vector<8x256xf32>
    %cst_52 = arith.constant dense<0.000000e+00> : vector<8xf32>
    %246 = vector.multi_reduction <add>, %245, %cst_52 [1] : vector<8x256xf32> to vector<8xf32>
    %247 = vector.shape_cast %246 : vector<8xf32> to vector<8x1xf32>
    %248 = vector.broadcast %0 : vector<1x256xf32> to vector<8x256xf32>
    %249 = arith.mulf %245, %248 : vector<8x256xf32>
    %cst_53 = arith.constant dense<0.000000e+00> : vector<8xf32>
    %250 = vector.multi_reduction <add>, %249, %cst_53 [1] : vector<8x256xf32> to vector<8xf32>
    %251 = vector.shape_cast %250 : vector<8xf32> to vector<8x1xf32>
    %252 = vector.broadcast %1 : vector<1x256xf32> to vector<8x256xf32>
    %253 = arith.mulf %245, %252 : vector<8x256xf32>
    %cst_54 = arith.constant dense<0.000000e+00> : vector<8xf32>
    %254 = vector.multi_reduction <add>, %253, %cst_54 [1] : vector<8x256xf32> to vector<8xf32>
    %255 = vector.shape_cast %254 : vector<8xf32> to vector<8x1xf32>
    %256 = vector.broadcast %2 : vector<1x256xf32> to vector<8x256xf32>
    %257 = arith.mulf %245, %256 : vector<8x256xf32>
    %cst_55 = arith.constant dense<0.000000e+00> : vector<8xf32>
    %258 = vector.multi_reduction <add>, %257, %cst_55 [1] : vector<8x256xf32> to vector<8xf32>
    %259 = vector.shape_cast %258 : vector<8xf32> to vector<8x1xf32>
    %cst_56 = arith.constant 0.0158730168 : f32
    %260 = vector.broadcast %cst_56 : f32 to vector<8x1xf32>
    %261 = arith.mulf %259, %260 : vector<8x1xf32>
    %cst_57 = arith.constant 9.99999974E-5 : f32
    %262 = vector.broadcast %cst_57 : f32 to vector<8x1xf32>
    %263 = arith.addf %261, %262 : vector<8x1xf32>
    %cst_58 = arith.constant 4.000000e+00 : f32
    %264 = vector.broadcast %cst_58 : f32 to vector<8x1xf32>
    %265 = arith.mulf %264, %263 : vector<8x1xf32>
    %266 = tpu.reciprocal %265 {approx = true} : vector<8x1xf32> -> vector<8x1xf32>
    %267 = arith.subf %251, %259 : vector<8x1xf32>
    %cst_59 = arith.constant 0.0158730168 : f32
    %268 = vector.broadcast %cst_59 : f32 to vector<8x1xf32>
    %269 = arith.mulf %267, %268 : vector<8x1xf32>
    %cst_60 = arith.constant 9.99999974E-5 : f32
    %270 = vector.broadcast %cst_60 : f32 to vector<8x1xf32>
    %271 = arith.addf %269, %270 : vector<8x1xf32>
    %cst_61 = arith.constant 4.000000e+00 : f32
    %272 = vector.broadcast %cst_61 : f32 to vector<8x1xf32>
    %273 = arith.mulf %272, %271 : vector<8x1xf32>
    %274 = tpu.reciprocal %273 {approx = true} : vector<8x1xf32> -> vector<8x1xf32>
    %275 = arith.subf %255, %259 : vector<8x1xf32>
    %cst_62 = arith.constant 0.0158730168 : f32
    %276 = vector.broadcast %cst_62 : f32 to vector<8x1xf32>
    %277 = arith.mulf %275, %276 : vector<8x1xf32>
    %cst_63 = arith.constant 9.99999974E-5 : f32
    %278 = vector.broadcast %cst_63 : f32 to vector<8x1xf32>
    %279 = arith.addf %277, %278 : vector<8x1xf32>
    %cst_64 = arith.constant 4.000000e+00 : f32
    %280 = vector.broadcast %cst_64 : f32 to vector<8x1xf32>
    %281 = arith.mulf %280, %279 : vector<8x1xf32>
    %282 = tpu.reciprocal %281 {approx = true} : vector<8x1xf32> -> vector<8x1xf32>
    %283 = arith.subf %247, %251 : vector<8x1xf32>
    %284 = arith.subf %283, %255 : vector<8x1xf32>
    %285 = arith.addf %284, %259 : vector<8x1xf32>
    %cst_65 = arith.constant 0.0158730168 : f32
    %286 = vector.broadcast %cst_65 : f32 to vector<8x1xf32>
    %287 = arith.mulf %285, %286 : vector<8x1xf32>
    %cst_66 = arith.constant 9.99999974E-5 : f32
    %288 = vector.broadcast %cst_66 : f32 to vector<8x1xf32>
    %289 = arith.addf %287, %288 : vector<8x1xf32>
    %cst_67 = arith.constant 4.000000e+00 : f32
    %290 = vector.broadcast %cst_67 : f32 to vector<8x1xf32>
    %291 = arith.mulf %290, %289 : vector<8x1xf32>
    %292 = tpu.reciprocal %291 {approx = true} : vector<8x1xf32> -> vector<8x1xf32>
    %293 = vector.shape_cast %6 : vector<1x256xi1> to vector<1x256xi1>
    %294 = vector.broadcast %293 : vector<1x256xi1> to vector<8x256xi1>
    %295 = vector.shape_cast %266 : vector<8x1xf32> to vector<8x1xf32>
    %296 = vector.broadcast %295 : vector<8x1xf32> to vector<8x256xf32>
    %297 = vector.shape_cast %274 : vector<8x1xf32> to vector<8x1xf32>
    %298 = vector.broadcast %297 : vector<8x1xf32> to vector<8x256xf32>
    %299 = arith.select %294, %296, %298 : vector<8x256xi1>, vector<8x256xf32>
    %300 = vector.shape_cast %6 : vector<1x256xi1> to vector<1x256xi1>
    %301 = vector.broadcast %300 : vector<1x256xi1> to vector<8x256xi1>
    %302 = vector.shape_cast %282 : vector<8x1xf32> to vector<8x1xf32>
    %303 = vector.broadcast %302 : vector<8x1xf32> to vector<8x256xf32>
    %304 = vector.shape_cast %292 : vector<8x1xf32> to vector<8x1xf32>
    %305 = vector.broadcast %304 : vector<8x1xf32> to vector<8x256xf32>
    %306 = arith.select %301, %303, %305 : vector<8x256xi1>, vector<8x256xf32>
    %307 = vector.shape_cast %4 : vector<1x256xi1> to vector<1x256xi1>
    %308 = vector.broadcast %307 : vector<1x256xi1> to vector<8x256xi1>
    %309 = arith.select %308, %299, %306 : vector<8x256xi1>, vector<8x256xf32>
    %310 = arith.mulf %245, %309 : vector<8x256xf32>
    %cst_68 = arith.constant 5.000000e-01 : f32
    %311 = vector.broadcast %cst_68 : f32 to vector<8x256xf32>
    %312 = arith.addf %310, %311 : vector<8x256xf32>
    %313 = arith.negf %312 : vector<8x256xf32>
    %314 = math.exp %313 : vector<8x256xf32>
    %cst_69 = arith.constant 1.000000e+00 : f32
    %315 = vector.broadcast %cst_69 : f32 to vector<8x256xf32>
    %316 = arith.addf %315, %314 : vector<8x256xf32>
    %317 = arith.divf %315, %316 : vector<8x256xf32>
    %318 = arith.mulf %199, %317 : vector<8x256xf32>
    %c1_70 = arith.constant 1 : index
    %c0_71 = arith.constant 0 : index
    %c0_72 = arith.constant 0 : index
    %319 = vector.load %arg7[%c1_70, %c0_71, %c0_72] : memref<2x8x256xf32, #tpu.memory_space<vmem>>, vector<1x8x256xf32>
    %320 = vector.shape_cast %319 : vector<1x8x256xf32> to vector<8x256xf32>
    %321 = vector.shape_cast %318 : vector<8x256xf32> to vector<1x8x256xf32>
    tpu.vector_store %arg7[%c1_70, %c0_71, %c0_72], %321 {strides = array<i32>} : memref<2x8x256xf32, #tpu.memory_space<vmem>>, vector<1x8x256xf32>,
    return
  }
  func.func @transform_0(%arg0: i32, %arg1: i32) -> (i32, i32, i32) {
    %c0_i32 = arith.constant 0 : i32
    %c0_i32_0 = arith.constant 0 : i32
    %c0_i32_1 = arith.constant 0 : i32
    return %arg0, %c0_i32, %c0_i32_0 : i32, i32, i32
  }
  func.func @transform_1(%arg0: i32, %arg1: i32) -> (i32, i32) {
    %c0_i32 = arith.constant 0 : i32
    %c0_i32_0 = arith.constant 0 : i32
    return %arg1, %c0_i32 : i32, i32
  }
  func.func @transform_2(%arg0: i32, %arg1: i32) -> (i32, i32) {
    %c0_i32 = arith.constant 0 : i32
    %c0_i32_0 = arith.constant 0 : i32
    return %arg1, %c0_i32 : i32, i32
  }
  func.func @transform_3(%arg0: i32, %arg1: i32) -> (i32, i32) {
    %c0_i32 = arith.constant 0 : i32
    %c0_i32_0 = arith.constant 0 : i32
    %c0_i32_1 = arith.constant 0 : i32
    return %c0_i32, %c0_i32_0 : i32, i32
  }
  func.func @transform_4(%arg0: i32, %arg1: i32) -> (i32, i32) {
    %c0_i32 = arith.constant 0 : i32
    %c0_i32_0 = arith.constant 0 : i32
    %c0_i32_1 = arith.constant 0 : i32
    return %c0_i32, %c0_i32_0 : i32, i32
  }
  func.func @transform_5(%arg0: i32, %arg1: i32) -> (i32, i32, i32) {
    %c0_i32 = arith.constant 0 : i32
    %c0_i32_0 = arith.constant 0 : i32
    return %arg0, %arg1, %c0_i32 : i32, i32, i32
  }
}

module attributes {stable_mosaic.version = 11 : i64} {
  func.func @_conv_sws_kernel(%arg0: i32, %arg1: i32, %arg2: memref<2x4x256xbf16, #tpu.memory_space<vmem>>, %arg3: memref<8x4xbf16, #tpu.memory_space<vmem>>, %arg4: memref<8x1xf32, #tpu.memory_space<vmem>>, %arg5: memref<1x256xf32, #tpu.memory_space<vmem>>, %arg6: memref<1x256xf32, #tpu.memory_space<vmem>>, %arg7: memref<2x8x256xf32, #tpu.memory_space<vmem>>) attributes {dimension_semantics = [#tpu.dimension_semantics<parallel>, #tpu.dimension_semantics<parallel>], iteration_bounds = array<i64: 1, 1>, scalar_prefetch = 0 : i64, scratch_operands = 0 : i64, tpu.core_type = #tpu.core_type<tc>, window_params = [{transform_indices = @transform_0, window_bounds = array<i64: 2, 4, 256>}, {transform_indices = @transform_1, window_bounds = array<i64: 8, 4>}, {transform_indices = @transform_2, window_bounds = array<i64: 8, 1>}, {pipeline_mode = #tpu.pipeline_mode<synchronous>, transform_indices = @transform_3, window_bounds = array<i64: 1, 256>}, {pipeline_mode = #tpu.pipeline_mode<synchronous>, transform_indices = @transform_4, window_bounds = array<i64: 1, 256>}, {transform_indices = @transform_5, window_bounds = array<i64: 2, 8, 256>}]} {
    %c0 = arith.constant 0 : index
    %c0_0 = arith.constant 0 : index
    %0 = vector.load %arg5[%c0, %c0_0] : memref<1x256xf32, #tpu.memory_space<vmem>>, vector<1x256xf32>
    %c0_1 = arith.constant 0 : index
    %c0_2 = arith.constant 0 : index
    %1 = vector.load %arg6[%c0_1, %c0_2] : memref<1x256xf32, #tpu.memory_space<vmem>>, vector<1x256xf32>
    %2 = arith.mulf %0, %1 : vector<1x256xf32>
    %cst = arith.constant 5.000000e-01 : f32
    %3 = vector.broadcast %cst : f32 to vector<1x256xf32>
    %4 = arith.cmpf ogt, %0, %3 : vector<1x256xf32>
    %cst_3 = arith.constant 5.000000e-01 : f32
    %5 = vector.broadcast %cst_3 : f32 to vector<1x256xf32>
    %6 = arith.cmpf ogt, %1, %5 : vector<1x256xf32>
    %c0_4 = arith.constant 0 : index
    %c0_5 = arith.constant 0 : index
    %7 = vector.load %arg4[%c0_4, %c0_5] : memref<8x1xf32, #tpu.memory_space<vmem>>, vector<8x1xf32>
    %c0_6 = arith.constant 0 : index
    %c0_7 = arith.constant 0 : index
    %8 = vector.load %arg3[%c0_6, %c0_7] : memref<8x4xbf16, #tpu.memory_space<vmem>>, vector<8x4xbf16>
    %9 = arith.extf %8 : vector<8x4xbf16> to vector<8x4xf32>
    %c0_8 = arith.constant 0 : index
    %c0_9 = arith.constant 0 : index
    %c0_10 = arith.constant 0 : index
    %10 = vector.load %arg2[%c0_8, %c0_9, %c0_10] : memref<2x4x256xbf16, #tpu.memory_space<vmem>>, vector<1x4x256xbf16>
    %11 = vector.shape_cast %10 : vector<1x4x256xbf16> to vector<4x256xbf16>
    %12 = arith.extf %11 : vector<4x256xbf16> to vector<4x256xf32>
    %13 = vector.extract_strided_slice %9 {offsets = [0, 0], sizes = [8, 1], strides = [1, 1]} : vector<8x4xf32> to vector<8x1xf32>
    %14 = vector.extract_strided_slice %12 {offsets = [0, 0], sizes = [1, 256], strides = [1, 1]} : vector<4x256xf32> to vector<1x256xf32>
    %15 = vector.broadcast %13 : vector<8x1xf32> to vector<8x256xf32>
    %16 = vector.broadcast %14 : vector<1x256xf32> to vector<8x256xf32>
    %17 = arith.mulf %15, %16 : vector<8x256xf32>
    %18 = vector.extract_strided_slice %9 {offsets = [0, 1], sizes = [8, 1], strides = [1, 1]} : vector<8x4xf32> to vector<8x1xf32>
    %19 = vector.extract_strided_slice %12 {offsets = [1, 0], sizes = [1, 256], strides = [1, 1]} : vector<4x256xf32> to vector<1x256xf32>
    %20 = vector.broadcast %18 : vector<8x1xf32> to vector<8x256xf32>
    %21 = vector.broadcast %19 : vector<1x256xf32> to vector<8x256xf32>
    %22 = arith.mulf %20, %21 : vector<8x256xf32>
    %23 = arith.addf %17, %22 : vector<8x256xf32>
    %24 = vector.extract_strided_slice %9 {offsets = [0, 2], sizes = [8, 1], strides = [1, 1]} : vector<8x4xf32> to vector<8x1xf32>
    %25 = vector.extract_strided_slice %12 {offsets = [2, 0], sizes = [1, 256], strides = [1, 1]} : vector<4x256xf32> to vector<1x256xf32>
    %26 = vector.broadcast %24 : vector<8x1xf32> to vector<8x256xf32>
    %27 = vector.broadcast %25 : vector<1x256xf32> to vector<8x256xf32>
    %28 = arith.mulf %26, %27 : vector<8x256xf32>
    %29 = arith.addf %23, %28 : vector<8x256xf32>
    %30 = vector.extract_strided_slice %9 {offsets = [0, 3], sizes = [8, 1], strides = [1, 1]} : vector<8x4xf32> to vector<8x1xf32>
    %31 = vector.extract_strided_slice %12 {offsets = [3, 0], sizes = [1, 256], strides = [1, 1]} : vector<4x256xf32> to vector<1x256xf32>
    %32 = vector.broadcast %30 : vector<8x1xf32> to vector<8x256xf32>
    %33 = vector.broadcast %31 : vector<1x256xf32> to vector<8x256xf32>
    %34 = arith.mulf %32, %33 : vector<8x256xf32>
    %35 = arith.addf %29, %34 : vector<8x256xf32>
    %36 = vector.broadcast %7 : vector<8x1xf32> to vector<8x256xf32>
    %37 = arith.addf %35, %36 : vector<8x256xf32>
    %38 = arith.negf %37 : vector<8x256xf32>
    %39 = math.exp %38 : vector<8x256xf32>
    %cst_11 = arith.constant 1.000000e+00 : f32
    %40 = vector.broadcast %cst_11 : f32 to vector<8x256xf32>
    %41 = arith.addf %40, %39 : vector<8x256xf32>
    %42 = arith.divf %40, %41 : vector<8x256xf32>
    %43 = arith.mulf %37, %42 : vector<8x256xf32>
    %cst_12 = arith.constant dense<0.000000e+00> : vector<8xf32>
    %44 = vector.multi_reduction <add>, %43, %cst_12 [1] : vector<8x256xf32> to vector<8xf32>
    %45 = vector.shape_cast %44 : vector<8xf32> to vector<8x1xf32>
    %46 = vector.broadcast %0 : vector<1x256xf32> to vector<8x256xf32>
    %47 = arith.mulf %43, %46 : vector<8x256xf32>
    %cst_13 = arith.constant dense<0.000000e+00> : vector<8xf32>
    %48 = vector.multi_reduction <add>, %47, %cst_13 [1] : vector<8x256xf32> to vector<8xf32>
    %49 = vector.shape_cast %48 : vector<8xf32> to vector<8x1xf32>
    %50 = vector.broadcast %1 : vector<1x256xf32> to vector<8x256xf32>
    %51 = arith.mulf %43, %50 : vector<8x256xf32>
    %cst_14 = arith.constant dense<0.000000e+00> : vector<8xf32>
    %52 = vector.multi_reduction <add>, %51, %cst_14 [1] : vector<8x256xf32> to vector<8xf32>
    %53 = vector.shape_cast %52 : vector<8xf32> to vector<8x1xf32>
    %54 = vector.broadcast %2 : vector<1x256xf32> to vector<8x256xf32>
    %55 = arith.mulf %43, %54 : vector<8x256xf32>
    %cst_15 = arith.constant dense<0.000000e+00> : vector<8xf32>
    %56 = vector.multi_reduction <add>, %55, %cst_15 [1] : vector<8x256xf32> to vector<8xf32>
    %57 = vector.shape_cast %56 : vector<8xf32> to vector<8x1xf32>
    %cst_16 = arith.constant 1.562500e-02 : f32
    %58 = vector.broadcast %cst_16 : f32 to vector<8x1xf32>
    %59 = arith.mulf %57, %58 : vector<8x1xf32>
    %60 = arith.subf %49, %57 : vector<8x1xf32>
    %cst_17 = arith.constant 1.562500e-02 : f32
    %61 = vector.broadcast %cst_17 : f32 to vector<8x1xf32>
    %62 = arith.mulf %60, %61 : vector<8x1xf32>
    %63 = arith.subf %53, %57 : vector<8x1xf32>
    %cst_18 = arith.constant 1.562500e-02 : f32
    %64 = vector.broadcast %cst_18 : f32 to vector<8x1xf32>
    %65 = arith.mulf %63, %64 : vector<8x1xf32>
    %66 = arith.subf %45, %49 : vector<8x1xf32>
    %67 = arith.subf %66, %53 : vector<8x1xf32>
    %68 = arith.addf %67, %57 : vector<8x1xf32>
    %cst_19 = arith.constant 1.562500e-02 : f32
    %69 = vector.broadcast %cst_19 : f32 to vector<8x1xf32>
    %70 = arith.mulf %68, %69 : vector<8x1xf32>
    %71 = vector.shape_cast %6 : vector<1x256xi1> to vector<1x256xi1>
    %72 = vector.broadcast %71 : vector<1x256xi1> to vector<8x256xi1>
    %73 = vector.shape_cast %59 : vector<8x1xf32> to vector<8x1xf32>
    %74 = vector.broadcast %73 : vector<8x1xf32> to vector<8x256xf32>
    %75 = vector.shape_cast %62 : vector<8x1xf32> to vector<8x1xf32>
    %76 = vector.broadcast %75 : vector<8x1xf32> to vector<8x256xf32>
    %77 = arith.select %72, %74, %76 : vector<8x256xi1>, vector<8x256xf32>
    %78 = vector.shape_cast %6 : vector<1x256xi1> to vector<1x256xi1>
    %79 = vector.broadcast %78 : vector<1x256xi1> to vector<8x256xi1>
    %80 = vector.shape_cast %65 : vector<8x1xf32> to vector<8x1xf32>
    %81 = vector.broadcast %80 : vector<8x1xf32> to vector<8x256xf32>
    %82 = vector.shape_cast %70 : vector<8x1xf32> to vector<8x1xf32>
    %83 = vector.broadcast %82 : vector<8x1xf32> to vector<8x256xf32>
    %84 = arith.select %79, %81, %83 : vector<8x256xi1>, vector<8x256xf32>
    %85 = vector.shape_cast %4 : vector<1x256xi1> to vector<1x256xi1>
    %86 = vector.broadcast %85 : vector<1x256xi1> to vector<8x256xi1>
    %87 = arith.select %86, %77, %84 : vector<8x256xi1>, vector<8x256xf32>
    %88 = arith.subf %43, %87 : vector<8x256xf32>
    %89 = arith.mulf %88, %88 : vector<8x256xf32>
    %cst_20 = arith.constant dense<0.000000e+00> : vector<8xf32>
    %90 = vector.multi_reduction <add>, %89, %cst_20 [1] : vector<8x256xf32> to vector<8xf32>
    %91 = vector.shape_cast %90 : vector<8xf32> to vector<8x1xf32>
    %92 = vector.broadcast %0 : vector<1x256xf32> to vector<8x256xf32>
    %93 = arith.mulf %89, %92 : vector<8x256xf32>
    %cst_21 = arith.constant dense<0.000000e+00> : vector<8xf32>
    %94 = vector.multi_reduction <add>, %93, %cst_21 [1] : vector<8x256xf32> to vector<8xf32>
    %95 = vector.shape_cast %94 : vector<8xf32> to vector<8x1xf32>
    %96 = vector.broadcast %1 : vector<1x256xf32> to vector<8x256xf32>
    %97 = arith.mulf %89, %96 : vector<8x256xf32>
    %cst_22 = arith.constant dense<0.000000e+00> : vector<8xf32>
    %98 = vector.multi_reduction <add>, %97, %cst_22 [1] : vector<8x256xf32> to vector<8xf32>
    %99 = vector.shape_cast %98 : vector<8xf32> to vector<8x1xf32>
    %100 = vector.broadcast %2 : vector<1x256xf32> to vector<8x256xf32>
    %101 = arith.mulf %89, %100 : vector<8x256xf32>
    %cst_23 = arith.constant dense<0.000000e+00> : vector<8xf32>
    %102 = vector.multi_reduction <add>, %101, %cst_23 [1] : vector<8x256xf32> to vector<8xf32>
    %103 = vector.shape_cast %102 : vector<8xf32> to vector<8x1xf32>
    %cst_24 = arith.constant 0.0158730168 : f32
    %104 = vector.broadcast %cst_24 : f32 to vector<8x1xf32>
    %105 = arith.mulf %103, %104 : vector<8x1xf32>
    %cst_25 = arith.constant 9.99999974E-5 : f32
    %106 = vector.broadcast %cst_25 : f32 to vector<8x1xf32>
    %107 = arith.addf %105, %106 : vector<8x1xf32>
    %cst_26 = arith.constant 4.000000e+00 : f32
    %108 = vector.broadcast %cst_26 : f32 to vector<8x1xf32>
    %109 = arith.mulf %108, %107 : vector<8x1xf32>
    %110 = tpu.reciprocal %109 {approx = true} : vector<8x1xf32> -> vector<8x1xf32>
    %111 = arith.subf %95, %103 : vector<8x1xf32>
    %cst_27 = arith.constant 0.0158730168 : f32
    %112 = vector.broadcast %cst_27 : f32 to vector<8x1xf32>
    %113 = arith.mulf %111, %112 : vector<8x1xf32>
    %cst_28 = arith.constant 9.99999974E-5 : f32
    %114 = vector.broadcast %cst_28 : f32 to vector<8x1xf32>
    %115 = arith.addf %113, %114 : vector<8x1xf32>
    %cst_29 = arith.constant 4.000000e+00 : f32
    %116 = vector.broadcast %cst_29 : f32 to vector<8x1xf32>
    %117 = arith.mulf %116, %115 : vector<8x1xf32>
    %118 = tpu.reciprocal %117 {approx = true} : vector<8x1xf32> -> vector<8x1xf32>
    %119 = arith.subf %99, %103 : vector<8x1xf32>
    %cst_30 = arith.constant 0.0158730168 : f32
    %120 = vector.broadcast %cst_30 : f32 to vector<8x1xf32>
    %121 = arith.mulf %119, %120 : vector<8x1xf32>
    %cst_31 = arith.constant 9.99999974E-5 : f32
    %122 = vector.broadcast %cst_31 : f32 to vector<8x1xf32>
    %123 = arith.addf %121, %122 : vector<8x1xf32>
    %cst_32 = arith.constant 4.000000e+00 : f32
    %124 = vector.broadcast %cst_32 : f32 to vector<8x1xf32>
    %125 = arith.mulf %124, %123 : vector<8x1xf32>
    %126 = tpu.reciprocal %125 {approx = true} : vector<8x1xf32> -> vector<8x1xf32>
    %127 = arith.subf %91, %95 : vector<8x1xf32>
    %128 = arith.subf %127, %99 : vector<8x1xf32>
    %129 = arith.addf %128, %103 : vector<8x1xf32>
    %cst_33 = arith.constant 0.0158730168 : f32
    %130 = vector.broadcast %cst_33 : f32 to vector<8x1xf32>
    %131 = arith.mulf %129, %130 : vector<8x1xf32>
    %cst_34 = arith.constant 9.99999974E-5 : f32
    %132 = vector.broadcast %cst_34 : f32 to vector<8x1xf32>
    %133 = arith.addf %131, %132 : vector<8x1xf32>
    %cst_35 = arith.constant 4.000000e+00 : f32
    %134 = vector.broadcast %cst_35 : f32 to vector<8x1xf32>
    %135 = arith.mulf %134, %133 : vector<8x1xf32>
    %136 = tpu.reciprocal %135 {approx = true} : vector<8x1xf32> -> vector<8x1xf32>
    %137 = vector.shape_cast %6 : vector<1x256xi1> to vector<1x256xi1>
    %138 = vector.broadcast %137 : vector<1x256xi1> to vector<8x256xi1>
    %139 = vector.shape_cast %110 : vector<8x1xf32> to vector<8x1xf32>
    %140 = vector.broadcast %139 : vector<8x1xf32> to vector<8x256xf32>
    %141 = vector.shape_cast %118 : vector<8x1xf32> to vector<8x1xf32>
    %142 = vector.broadcast %141 : vector<8x1xf32> to vector<8x256xf32>
    %143 = arith.select %138, %140, %142 : vector<8x256xi1>, vector<8x256xf32>
    %144 = vector.shape_cast %6 : vector<1x256xi1> to vector<1x256xi1>
    %145 = vector.broadcast %144 : vector<1x256xi1> to vector<8x256xi1>
    %146 = vector.shape_cast %126 : vector<8x1xf32> to vector<8x1xf32>
    %147 = vector.broadcast %146 : vector<8x1xf32> to vector<8x256xf32>
    %148 = vector.shape_cast %136 : vector<8x1xf32> to vector<8x1xf32>
    %149 = vector.broadcast %148 : vector<8x1xf32> to vector<8x256xf32>
    %150 = arith.select %145, %147, %149 : vector<8x256xi1>, vector<8x256xf32>
    %151 = vector.shape_cast %4 : vector<1x256xi1> to vector<1x256xi1>
    %152 = vector.broadcast %151 : vector<1x256xi1> to vector<8x256xi1>
    %153 = arith.select %152, %143, %150 : vector<8x256xi1>, vector<8x256xf32>
    %154 = arith.mulf %89, %153 : vector<8x256xf32>
    %cst_36 = arith.constant 5.000000e-01 : f32
    %155 = vector.broadcast %cst_36 : f32 to vector<8x256xf32>
    %156 = arith.addf %154, %155 : vector<8x256xf32>
    %157 = arith.negf %156 : vector<8x256xf32>
    %158 = math.exp %157 : vector<8x256xf32>
    %cst_37 = arith.constant 1.000000e+00 : f32
    %159 = vector.broadcast %cst_37 : f32 to vector<8x256xf32>
    %160 = arith.addf %159, %158 : vector<8x256xf32>
    %161 = arith.divf %159, %160 : vector<8x256xf32>
    %162 = arith.mulf %43, %161 : vector<8x256xf32>
    %c0_38 = arith.constant 0 : index
    %c0_39 = arith.constant 0 : index
    %c0_40 = arith.constant 0 : index
    %163 = vector.load %arg7[%c0_38, %c0_39, %c0_40] : memref<2x8x256xf32, #tpu.memory_space<vmem>>, vector<1x8x256xf32>
    %164 = vector.shape_cast %163 : vector<1x8x256xf32> to vector<8x256xf32>
    %165 = vector.shape_cast %162 : vector<8x256xf32> to vector<1x8x256xf32>
    tpu.vector_store %arg7[%c0_38, %c0_39, %c0_40], %165 {strides = array<i32>} : memref<2x8x256xf32, #tpu.memory_space<vmem>>, vector<1x8x256xf32>,
    %c1 = arith.constant 1 : index
    %c0_41 = arith.constant 0 : index
    %c0_42 = arith.constant 0 : index
    %166 = vector.load %arg2[%c1, %c0_41, %c0_42] : memref<2x4x256xbf16, #tpu.memory_space<vmem>>, vector<1x4x256xbf16>
    %167 = vector.shape_cast %166 : vector<1x4x256xbf16> to vector<4x256xbf16>
    %168 = arith.extf %167 : vector<4x256xbf16> to vector<4x256xf32>
    %169 = vector.extract_strided_slice %9 {offsets = [0, 0], sizes = [8, 1], strides = [1, 1]} : vector<8x4xf32> to vector<8x1xf32>
    %170 = vector.extract_strided_slice %168 {offsets = [0, 0], sizes = [1, 256], strides = [1, 1]} : vector<4x256xf32> to vector<1x256xf32>
    %171 = vector.broadcast %169 : vector<8x1xf32> to vector<8x256xf32>
    %172 = vector.broadcast %170 : vector<1x256xf32> to vector<8x256xf32>
    %173 = arith.mulf %171, %172 : vector<8x256xf32>
    %174 = vector.extract_strided_slice %9 {offsets = [0, 1], sizes = [8, 1], strides = [1, 1]} : vector<8x4xf32> to vector<8x1xf32>
    %175 = vector.extract_strided_slice %168 {offsets = [1, 0], sizes = [1, 256], strides = [1, 1]} : vector<4x256xf32> to vector<1x256xf32>
    %176 = vector.broadcast %174 : vector<8x1xf32> to vector<8x256xf32>
    %177 = vector.broadcast %175 : vector<1x256xf32> to vector<8x256xf32>
    %178 = arith.mulf %176, %177 : vector<8x256xf32>
    %179 = arith.addf %173, %178 : vector<8x256xf32>
    %180 = vector.extract_strided_slice %9 {offsets = [0, 2], sizes = [8, 1], strides = [1, 1]} : vector<8x4xf32> to vector<8x1xf32>
    %181 = vector.extract_strided_slice %168 {offsets = [2, 0], sizes = [1, 256], strides = [1, 1]} : vector<4x256xf32> to vector<1x256xf32>
    %182 = vector.broadcast %180 : vector<8x1xf32> to vector<8x256xf32>
    %183 = vector.broadcast %181 : vector<1x256xf32> to vector<8x256xf32>
    %184 = arith.mulf %182, %183 : vector<8x256xf32>
    %185 = arith.addf %179, %184 : vector<8x256xf32>
    %186 = vector.extract_strided_slice %9 {offsets = [0, 3], sizes = [8, 1], strides = [1, 1]} : vector<8x4xf32> to vector<8x1xf32>
    %187 = vector.extract_strided_slice %168 {offsets = [3, 0], sizes = [1, 256], strides = [1, 1]} : vector<4x256xf32> to vector<1x256xf32>
    %188 = vector.broadcast %186 : vector<8x1xf32> to vector<8x256xf32>
    %189 = vector.broadcast %187 : vector<1x256xf32> to vector<8x256xf32>
    %190 = arith.mulf %188, %189 : vector<8x256xf32>
    %191 = arith.addf %185, %190 : vector<8x256xf32>
    %192 = vector.broadcast %7 : vector<8x1xf32> to vector<8x256xf32>
    %193 = arith.addf %191, %192 : vector<8x256xf32>
    %194 = arith.negf %193 : vector<8x256xf32>
    %195 = math.exp %194 : vector<8x256xf32>
    %cst_43 = arith.constant 1.000000e+00 : f32
    %196 = vector.broadcast %cst_43 : f32 to vector<8x256xf32>
    %197 = arith.addf %196, %195 : vector<8x256xf32>
    %198 = arith.divf %196, %197 : vector<8x256xf32>
    %199 = arith.mulf %193, %198 : vector<8x256xf32>
    %cst_44 = arith.constant dense<0.000000e+00> : vector<8xf32>
    %200 = vector.multi_reduction <add>, %199, %cst_44 [1] : vector<8x256xf32> to vector<8xf32>
    %201 = vector.shape_cast %200 : vector<8xf32> to vector<8x1xf32>
    %202 = vector.broadcast %0 : vector<1x256xf32> to vector<8x256xf32>
    %203 = arith.mulf %199, %202 : vector<8x256xf32>
    %cst_45 = arith.constant dense<0.000000e+00> : vector<8xf32>
    %204 = vector.multi_reduction <add>, %203, %cst_45 [1] : vector<8x256xf32> to vector<8xf32>
    %205 = vector.shape_cast %204 : vector<8xf32> to vector<8x1xf32>
    %206 = vector.broadcast %1 : vector<1x256xf32> to vector<8x256xf32>
    %207 = arith.mulf %199, %206 : vector<8x256xf32>
    %cst_46 = arith.constant dense<0.000000e+00> : vector<8xf32>
    %208 = vector.multi_reduction <add>, %207, %cst_46 [1] : vector<8x256xf32> to vector<8xf32>
    %209 = vector.shape_cast %208 : vector<8xf32> to vector<8x1xf32>
    %210 = vector.broadcast %2 : vector<1x256xf32> to vector<8x256xf32>
    %211 = arith.mulf %199, %210 : vector<8x256xf32>
    %cst_47 = arith.constant dense<0.000000e+00> : vector<8xf32>
    %212 = vector.multi_reduction <add>, %211, %cst_47 [1] : vector<8x256xf32> to vector<8xf32>
    %213 = vector.shape_cast %212 : vector<8xf32> to vector<8x1xf32>
    %cst_48 = arith.constant 1.562500e-02 : f32
    %214 = vector.broadcast %cst_48 : f32 to vector<8x1xf32>
    %215 = arith.mulf %213, %214 : vector<8x1xf32>
    %216 = arith.subf %205, %213 : vector<8x1xf32>
    %cst_49 = arith.constant 1.562500e-02 : f32
    %217 = vector.broadcast %cst_49 : f32 to vector<8x1xf32>
    %218 = arith.mulf %216, %217 : vector<8x1xf32>
    %219 = arith.subf %209, %213 : vector<8x1xf32>
    %cst_50 = arith.constant 1.562500e-02 : f32
    %220 = vector.broadcast %cst_50 : f32 to vector<8x1xf32>
    %221 = arith.mulf %219, %220 : vector<8x1xf32>
    %222 = arith.subf %201, %205 : vector<8x1xf32>
    %223 = arith.subf %222, %209 : vector<8x1xf32>
    %224 = arith.addf %223, %213 : vector<8x1xf32>
    %cst_51 = arith.constant 1.562500e-02 : f32
    %225 = vector.broadcast %cst_51 : f32 to vector<8x1xf32>
    %226 = arith.mulf %224, %225 : vector<8x1xf32>
    %227 = vector.shape_cast %6 : vector<1x256xi1> to vector<1x256xi1>
    %228 = vector.broadcast %227 : vector<1x256xi1> to vector<8x256xi1>
    %229 = vector.shape_cast %215 : vector<8x1xf32> to vector<8x1xf32>
    %230 = vector.broadcast %229 : vector<8x1xf32> to vector<8x256xf32>
    %231 = vector.shape_cast %218 : vector<8x1xf32> to vector<8x1xf32>
    %232 = vector.broadcast %231 : vector<8x1xf32> to vector<8x256xf32>
    %233 = arith.select %228, %230, %232 : vector<8x256xi1>, vector<8x256xf32>
    %234 = vector.shape_cast %6 : vector<1x256xi1> to vector<1x256xi1>
    %235 = vector.broadcast %234 : vector<1x256xi1> to vector<8x256xi1>
    %236 = vector.shape_cast %221 : vector<8x1xf32> to vector<8x1xf32>
    %237 = vector.broadcast %236 : vector<8x1xf32> to vector<8x256xf32>
    %238 = vector.shape_cast %226 : vector<8x1xf32> to vector<8x1xf32>
    %239 = vector.broadcast %238 : vector<8x1xf32> to vector<8x256xf32>
    %240 = arith.select %235, %237, %239 : vector<8x256xi1>, vector<8x256xf32>
    %241 = vector.shape_cast %4 : vector<1x256xi1> to vector<1x256xi1>
    %242 = vector.broadcast %241 : vector<1x256xi1> to vector<8x256xi1>
    %243 = arith.select %242, %233, %240 : vector<8x256xi1>, vector<8x256xf32>
    %244 = arith.subf %199, %243 : vector<8x256xf32>
    %245 = arith.mulf %244, %244 : vector<8x256xf32>
    %cst_52 = arith.constant dense<0.000000e+00> : vector<8xf32>
    %246 = vector.multi_reduction <add>, %245, %cst_52 [1] : vector<8x256xf32> to vector<8xf32>
    %247 = vector.shape_cast %246 : vector<8xf32> to vector<8x1xf32>
    %248 = vector.broadcast %0 : vector<1x256xf32> to vector<8x256xf32>
    %249 = arith.mulf %245, %248 : vector<8x256xf32>
    %cst_53 = arith.constant dense<0.000000e+00> : vector<8xf32>
    %250 = vector.multi_reduction <add>, %249, %cst_53 [1] : vector<8x256xf32> to vector<8xf32>
    %251 = vector.shape_cast %250 : vector<8xf32> to vector<8x1xf32>
    %252 = vector.broadcast %1 : vector<1x256xf32> to vector<8x256xf32>
    %253 = arith.mulf %245, %252 : vector<8x256xf32>
    %cst_54 = arith.constant dense<0.000000e+00> : vector<8xf32>
    %254 = vector.multi_reduction <add>, %253, %cst_54 [1] : vector<8x256xf32> to vector<8xf32>
    %255 = vector.shape_cast %254 : vector<8xf32> to vector<8x1xf32>
    %256 = vector.broadcast %2 : vector<1x256xf32> to vector<8x256xf32>
    %257 = arith.mulf %245, %256 : vector<8x256xf32>
    %cst_55 = arith.constant dense<0.000000e+00> : vector<8xf32>
    %258 = vector.multi_reduction <add>, %257, %cst_55 [1] : vector<8x256xf32> to vector<8xf32>
    %259 = vector.shape_cast %258 : vector<8xf32> to vector<8x1xf32>
    %cst_56 = arith.constant 0.0158730168 : f32
    %260 = vector.broadcast %cst_56 : f32 to vector<8x1xf32>
    %261 = arith.mulf %259, %260 : vector<8x1xf32>
    %cst_57 = arith.constant 9.99999974E-5 : f32
    %262 = vector.broadcast %cst_57 : f32 to vector<8x1xf32>
    %263 = arith.addf %261, %262 : vector<8x1xf32>
    %cst_58 = arith.constant 4.000000e+00 : f32
    %264 = vector.broadcast %cst_58 : f32 to vector<8x1xf32>
    %265 = arith.mulf %264, %263 : vector<8x1xf32>
    %266 = tpu.reciprocal %265 {approx = true} : vector<8x1xf32> -> vector<8x1xf32>
    %267 = arith.subf %251, %259 : vector<8x1xf32>
    %cst_59 = arith.constant 0.0158730168 : f32
    %268 = vector.broadcast %cst_59 : f32 to vector<8x1xf32>
    %269 = arith.mulf %267, %268 : vector<8x1xf32>
    %cst_60 = arith.constant 9.99999974E-5 : f32
    %270 = vector.broadcast %cst_60 : f32 to vector<8x1xf32>
    %271 = arith.addf %269, %270 : vector<8x1xf32>
    %cst_61 = arith.constant 4.000000e+00 : f32
    %272 = vector.broadcast %cst_61 : f32 to vector<8x1xf32>
    %273 = arith.mulf %272, %271 : vector<8x1xf32>
    %274 = tpu.reciprocal %273 {approx = true} : vector<8x1xf32> -> vector<8x1xf32>
    %275 = arith.subf %255, %259 : vector<8x1xf32>
    %cst_62 = arith.constant 0.0158730168 : f32
    %276 = vector.broadcast %cst_62 : f32 to vector<8x1xf32>
    %277 = arith.mulf %275, %276 : vector<8x1xf32>
    %cst_63 = arith.constant 9.99999974E-5 : f32
    %278 = vector.broadcast %cst_63 : f32 to vector<8x1xf32>
    %279 = arith.addf %277, %278 : vector<8x1xf32>
    %cst_64 = arith.constant 4.000000e+00 : f32
    %280 = vector.broadcast %cst_64 : f32 to vector<8x1xf32>
    %281 = arith.mulf %280, %279 : vector<8x1xf32>
    %282 = tpu.reciprocal %281 {approx = true} : vector<8x1xf32> -> vector<8x1xf32>
    %283 = arith.subf %247, %251 : vector<8x1xf32>
    %284 = arith.subf %283, %255 : vector<8x1xf32>
    %285 = arith.addf %284, %259 : vector<8x1xf32>
    %cst_65 = arith.constant 0.0158730168 : f32
    %286 = vector.broadcast %cst_65 : f32 to vector<8x1xf32>
    %287 = arith.mulf %285, %286 : vector<8x1xf32>
    %cst_66 = arith.constant 9.99999974E-5 : f32
    %288 = vector.broadcast %cst_66 : f32 to vector<8x1xf32>
    %289 = arith.addf %287, %288 : vector<8x1xf32>
    %cst_67 = arith.constant 4.000000e+00 : f32
    %290 = vector.broadcast %cst_67 : f32 to vector<8x1xf32>
    %291 = arith.mulf %290, %289 : vector<8x1xf32>
    %292 = tpu.reciprocal %291 {approx = true} : vector<8x1xf32> -> vector<8x1xf32>
    %293 = vector.shape_cast %6 : vector<1x256xi1> to vector<1x256xi1>
    %294 = vector.broadcast %293 : vector<1x256xi1> to vector<8x256xi1>
    %295 = vector.shape_cast %266 : vector<8x1xf32> to vector<8x1xf32>
    %296 = vector.broadcast %295 : vector<8x1xf32> to vector<8x256xf32>
    %297 = vector.shape_cast %274 : vector<8x1xf32> to vector<8x1xf32>
    %298 = vector.broadcast %297 : vector<8x1xf32> to vector<8x256xf32>
    %299 = arith.select %294, %296, %298 : vector<8x256xi1>, vector<8x256xf32>
    %300 = vector.shape_cast %6 : vector<1x256xi1> to vector<1x256xi1>
    %301 = vector.broadcast %300 : vector<1x256xi1> to vector<8x256xi1>
    %302 = vector.shape_cast %282 : vector<8x1xf32> to vector<8x1xf32>
    %303 = vector.broadcast %302 : vector<8x1xf32> to vector<8x256xf32>
    %304 = vector.shape_cast %292 : vector<8x1xf32> to vector<8x1xf32>
    %305 = vector.broadcast %304 : vector<8x1xf32> to vector<8x256xf32>
    %306 = arith.select %301, %303, %305 : vector<8x256xi1>, vector<8x256xf32>
    %307 = vector.shape_cast %4 : vector<1x256xi1> to vector<1x256xi1>
    %308 = vector.broadcast %307 : vector<1x256xi1> to vector<8x256xi1>
    %309 = arith.select %308, %299, %306 : vector<8x256xi1>, vector<8x256xf32>
    %310 = arith.mulf %245, %309 : vector<8x256xf32>
    %cst_68 = arith.constant 5.000000e-01 : f32
    %311 = vector.broadcast %cst_68 : f32 to vector<8x256xf32>
    %312 = arith.addf %310, %311 : vector<8x256xf32>
    %313 = arith.negf %312 : vector<8x256xf32>
    %314 = math.exp %313 : vector<8x256xf32>
    %cst_69 = arith.constant 1.000000e+00 : f32
    %315 = vector.broadcast %cst_69 : f32 to vector<8x256xf32>
    %316 = arith.addf %315, %314 : vector<8x256xf32>
    %317 = arith.divf %315, %316 : vector<8x256xf32>
    %318 = arith.mulf %199, %317 : vector<8x256xf32>
    %c1_70 = arith.constant 1 : index
    %c0_71 = arith.constant 0 : index
    %c0_72 = arith.constant 0 : index
    %319 = vector.load %arg7[%c1_70, %c0_71, %c0_72] : memref<2x8x256xf32, #tpu.memory_space<vmem>>, vector<1x8x256xf32>
    %320 = vector.shape_cast %319 : vector<1x8x256xf32> to vector<8x256xf32>
    %321 = vector.shape_cast %318 : vector<8x256xf32> to vector<1x8x256xf32>
    tpu.vector_store %arg7[%c1_70, %c0_71, %c0_72], %321 {strides = array<i32>} : memref<2x8x256xf32, #tpu.memory_space<vmem>>, vector<1x8x256xf32>,
    return
  }
  func.func @transform_0(%arg0: i32, %arg1: i32) -> (i32, i32, i32) {
    %c0_i32 = arith.constant 0 : i32
    %c0_i32_0 = arith.constant 0 : i32
    %c0_i32_1 = arith.constant 0 : i32
    return %arg0, %c0_i32, %c0_i32_0 : i32, i32, i32
  }
  func.func @transform_1(%arg0: i32, %arg1: i32) -> (i32, i32) {
    %c0_i32 = arith.constant 0 : i32
    %c0_i32_0 = arith.constant 0 : i32
    return %arg1, %c0_i32 : i32, i32
  }
  func.func @transform_2(%arg0: i32, %arg1: i32) -> (i32, i32) {
    %c0_i32 = arith.constant 0 : i32
    %c0_i32_0 = arith.constant 0 : i32
    return %arg1, %c0_i32 : i32, i32
  }
  func.func @transform_3(%arg0: i32, %arg1: i32) -> (i32, i32) {
    %c0_i32 = arith.constant 0 : i32
    %c0_i32_0 = arith.constant 0 : i32
    %c0_i32_1 = arith.constant 0 : i32
    return %c0_i32, %c0_i32_0 : i32, i32
  }
  func.func @transform_4(%arg0: i32, %arg1: i32) -> (i32, i32) {
    %c0_i32 = arith.constant 0 : i32
    %c0_i32_0 = arith.constant 0 : i32
    %c0_i32_1 = arith.constant 0 : i32
    return %c0_i32, %c0_i32_0 : i32, i32
  }
  func.func @transform_5(%arg0: i32, %arg1: i32) -> (i32, i32, i32) {
    %c0_i32 = arith.constant 0 : i32
    %c0_i32_0 = arith.constant 0 : i32
    return %arg0, %arg1, %c0_i32 : i32, i32, i32
  }
}

</mosaic_0001>

<bundles_post_ra>
// kernel: tpu_custom_call.1
= control target key start
LH: loop header
LB: loop body
LE: loop exit
PB: predicated region body
PF: predicated region fallthrough
CT: control target
= control target key end

     0   :  { %v37_v0 = vlaneseq  ;;  %v630_v3 = vmov 0   ;;  %v631_v5 = vmov 2   ;;  %s903_s0 = inlined_call_operand.vmem [shape: bf16[2,4,256], index: 0, kind: input, shape index: {}]   ;;  %s904_s1 = inlined_call_operand.vmem [shape: bf16[8,4], index: 1, kind: input, shape index: {}]   ;;  %s905_s2 = inlined_call_operand.vmem [shape: f32[8,1], index: 2, kind: input, shape index: {}]   ;;  %s906_s3 = inlined_call_operand.vmem [shape: f32[1,256], index: 3, kind: input, shape index: {}]   ;;  %s907_s4 = inlined_call_operand.vmem [shape: f32[1,256], index: 4, kind: input, shape index: {}]   ;;  %s908_s5 = inlined_call_operand.hbm [shape: f32[2,8,256], index: 5, kind: output, shape index: {}]  }
   0x1   :  { %v670_v1 = vld [vmem:[%s906_s3] sm:$0x3]  ;;  %554 = vset.pattern.permute.xlu0 %v630_v3  ;;  %556 = vset.pattern.permute.xlu1 %v631_v5 }
   0x2   :  { %v675_v2 = vld [vmem:[%s907_s4] sm:$0x3]  ;;  %vm24_vm0 = vcmp.gt.f32.partialorder %v670_v1, 0.5  ;;  %v38_v6 = vshrl.u32 %v37_v0, 7 }
   0x3   :  { %vm25_vm1 = vcmp.gt.f32.partialorder %v675_v2, 0.5  ;;  %v27_v4 = vld [vmem:[%s904_s1] sm:$0xf]  ;;  %v684_v8 = vsel %vm24_vm0, 1, %v630_v3 }
   0x4   :  { %v682_v7 = vsel %vm25_vm1, 1, %v630_v3  ;;  %v28_v9 = vunpack.c.l.bf16 %v27_v4 }
   0x5   :  { %10 = vsyncpa [#allocation3], 0  ;;  %v686_v10 = vsub.s32 0, %v38_v6  ;;  %v688_v11 = vsub.s32 1, %v38_v6  ;;  %v632_v16 = vmov 1   ;;  %v633_v17 = vmov 3  }
   0x6   :  { %33 = vperm.xlu0 %554, %v28_v9   ;;  %84 = vperm.xlu1 %556, %v28_v9   ;;  %v26_v18 = vld [vmem:[%s905_s2] sm:$0xff]  ;;  %v43_v21 = vsub.s32 4, %v38_v6  ;;  %v89_v23 = vsub.s32 2, %v38_v6  ;;  %v93_v24 = vsub.s32 6, %v38_v6  ;;  %v67_v25 = vsub.s32 5, %v38_v6 }
   0x7   :  { %v220_v12 = vrot.slane %v682_v7, %v686_v10  ;;  %v224_v13 = vrot.slane %v682_v7, %v688_v11  ;;  %v235_v14 = vrot.slane %v684_v8, %v686_v10  ;;  %v239_v15 = vrot.slane %v684_v8, %v688_v11  ;;  %v29_v19 = vld [vmem:[%s903_s0] sm:$0xff]   ;;  %s634_s0 = smov [#allocation2]  }
   0x8   :  { %v30_v20 = vunpack.c.l.bf16 %v29_v19  ;;  %v315_v22 = vunpack.c.h.bf16 %v29_v19  ;;  %v115_v26 = vsub.s32 3, %v38_v6  ;;  %v119_v27 = vsub.s32 7, %v38_v6  ;;  %s527_s2 = sshll.u32 %s634_s0, 4  ;;  %s528_s2 = int_to_ptr.vmem [resolvable:$true] %s527_s2 }
   0x9   :  { %vm779_vm2 = vcmp.eq.s32.totalorder %v220_v12, 1  ;;  %vm786_vm3 = vcmp.eq.s32.totalorder %v224_v13, 1  ;;  %vm793_vm4 = vcmp.eq.s32.totalorder %v235_v14, 1  ;;  %vm800_vm5 = vcmp.eq.s32.totalorder %v239_v15, 1  ;;  %s608_s25 = scalar_lea.vmem %s528_s2, 512  ;;  %p613_p1 = scmp.lt.s32.totalorder %s528_s2, %s528_s2 }
   0xa   :  { %555 = vset.pattern.permute.xlu0 %v632_v16  ;;  %557 = vset.pattern.permute.xlu1 %v633_v17  ;;  %v40_v28 = vrot.slane %v30_v20, %v686_v10  ;;  %v44_v29 = vrot.slane %v30_v20, %v43_v21  ;;  %v320_v30 = vrot.slane %v315_v22, %v686_v10  ;;  %p609_p0 = scmp.ne.s32.totalorder %s528_s2, %s608_s25  ;;  %p614_p2 = scmp.lt.s32.totalorder %s608_s25, %s608_s25 }
   0xb   :  { %58 = vperm.xlu0 %555, %v28_v9   ;;  %110 = vperm.xlu1 %557, %v28_v9   ;;  %v324_v31 = vrot.slane %v315_v22, %v43_v21  ;;  %v90_v32 = vrot.slane %v30_v20, %v89_v23  ;;  %v94_v33 = vrot.slane %v30_v20, %v93_v24 }
   0xc   :  { %v362_v34 = vrot.slane %v315_v22, %v89_v23  ;;  %v366_v35 = vrot.slane %v315_v22, %v93_v24  ;;  %v64_v36 = vrot.slane %v30_v20, %v688_v11  ;;  %v68_v37 = vrot.slane %v30_v20, %v67_v25  ;;  %p615_p3 = por %p614_p2, %p613_p1 }
   0xd   :  { %v340_v38 = vrot.slane %v315_v22, %v688_v11  ;;  %v344_v39 = vrot.slane %v315_v22, %v67_v25  ;;  %v116_v40 = vrot.slane %v30_v20, %v115_v26  ;;  %v120_v41 = vrot.slane %v30_v20, %v119_v27 }
   0xe   :  { %v384_v42 = vrot.slane %v315_v22, %v115_v26  ;;  %v388_v43 = vrot.slane %v315_v22, %v119_v27  ;;  %v50_v44 = vrot.slane %v40_v28, %v686_v10  ;;  %v54_v45 = vrot.slane %v44_v29, %v686_v10  ;;  %p616_p4 = pnand %p615_p3, %p609_p0 }
   0xf   :  { %558 = vset.pattern.permute.xlu1 %v630_v3  ;;  %559 = vset.pattern.permute.xlu0 %v630_v3  ;;  %v330_v46 = vrot.slane %v320_v30, %v686_v10  ;;  %v334_v47 = vrot.slane %v324_v31, %v686_v10  ;;  %v100_v50 = vrot.slane %v90_v32, %v89_v23 }
  0x10   :  { %137 = vperm.xlu1 %558, %v26_v18   ;;  %v104_v51 = vrot.slane %v94_v33, %v89_v23  ;;  %v372_v52 = vrot.slane %v362_v34, %v89_v23  ;;  %v376_v53 = vrot.slane %v366_v35, %v89_v23  ;;  %v74_v54 = vrot.slane %v64_v36, %v688_v11 }
  0x11   :  { %v78_v55 = vrot.slane %v68_v37, %v688_v11  ;;  %v350_v56 = vrot.slane %v340_v38, %v688_v11  ;;  %v354_v57 = vrot.slane %v344_v39, %v688_v11  ;;  %v126_v58 = vrot.slane %v116_v40, %v115_v26 }
  0x12   :  { %v130_v59 = vrot.slane %v120_v41, %v115_v26  ;;  %v394_v60 = vrot.slane %v384_v42, %v115_v26  ;;  %v398_v61 = vrot.slane %v388_v43, %v115_v26 }
  0x81   :  { %v34_v48 = vpop.permute.xlu0 %33  ;;  %v85_v49 = vpop.permute.xlu1 %84 }
  0x82   :  { %v55_v62 = vmul.f32 %v50_v44, %v34_v48  ;;  %v56_v63 = vmul.f32 %v54_v45, %v34_v48  ;;  %v335_v0 = vmul.f32 %v330_v46, %v34_v48  ;;  %v336_v3 = vmul.f32 %v334_v47, %v34_v48 }
  0x83   :  { %v105_v4 = vmul.f32 %v100_v50, %v85_v49  ;;  %v106_v5 = vmul.f32 %v104_v51, %v85_v49  ;;  %v377_v6 = vmul.f32 %v372_v52, %v85_v49  ;;  %v378_v9 = vmul.f32 %v376_v53, %v85_v49 }
  0x86   :  { %v59_v16 = vpop.permute.xlu0 %58  ;;  %v111_v17 = vpop.permute.xlu1 %110 }
  0x87   :  { %v79_v18 = vmul.f32 %v74_v54, %v59_v16  ;;  %v80_v19 = vmul.f32 %v78_v55, %v59_v16  ;;  %v355_v20 = vmul.f32 %v350_v56, %v59_v16  ;;  %v356_v21 = vmul.f32 %v354_v57, %v59_v16 }
  0x88   :  { %v131_v22 = vmul.f32 %v126_v58, %v111_v17  ;;  %v132_v23 = vmul.f32 %v130_v59, %v111_v17  ;;  %v399_v24 = vmul.f32 %v394_v60, %v111_v17  ;;  %v400_v25 = vmul.f32 %v398_v61, %v111_v17 }
  0x89   :  { %v81_v27 = vadd.f32 %v79_v18, %v55_v62  ;;  %v82_v26 = vadd.f32 %v80_v19, %v56_v63  ;;  %v357_v28 = vadd.f32 %v355_v20, %v335_v0  ;;  %v358_v29 = vadd.f32 %v356_v21, %v336_v3 }
  0x8a   :  { %v718_v55 = vrot.slane %v670_v1, %v686_v10  ;;  %v722_v57 = vrot.slane %v670_v1, %v688_v11  ;;  %v23_v60 = vmul.f32 %v675_v2, %v670_v1  ;;  %v732_v63 = vrot.slane %v675_v2, %v686_v10 }
  0x8b   :  { %v107_v30 = vadd.f32 %v105_v4, %v81_v27  ;;  %v108_v31 = vadd.f32 %v106_v5, %v82_v26  ;;  %v379_v32 = vadd.f32 %v377_v6, %v357_v28  ;;  %v380_v33 = vadd.f32 %v378_v9, %v358_v29  ;;  %v138_v34 = vpop.permute.xlu1 %137 }
  0x8c   :  { %v736_v0 = vrot.slane %v675_v2, %v688_v11  ;;  %v749_v16 = vrot.slane %v23_v60, %v686_v10  ;;  %v756_v19 = vrot.slane %v23_v60, %v688_v11 }
  0x8d   :  { %v133_v35 = vadd.f32 %v131_v22, %v107_v30  ;;  %v134_v36 = vadd.f32 %v132_v23, %v108_v31  ;;  %v401_v37 = vadd.f32 %v399_v24, %v379_v32  ;;  %v402_v38 = vadd.f32 %v400_v25, %v380_v33 }
  0x8f   :  { %v140_v39 = vadd.f32 %v138_v34, %v133_v35  ;;  %v141_v40 = vadd.f32 %v138_v34, %v134_v36  ;;  %v403_v41 = vadd.f32 %v401_v37, %v138_v34  ;;  %v404_v42 = vadd.f32 %v402_v38, %v138_v34 }
  0x91   :  { %v538_v43 = vmul.f32 -1.442695, %v140_v39  ;;  %v539_v44 = vmul.f32 -1.442695, %v141_v40  ;;  %v543_v45 = vmul.f32 -1.442695, %v403_v41 }
  0x92   :  { %v544_v46 = vmul.f32 -1.442695, %v404_v42 }
  0x93   :  { %560 = vpow2.f32 %v538_v43 }
  0x94   :  { %562 = vpow2.f32 %v539_v44 }
  0x95   :  { %564 = vpow2.f32 %v543_v45 }
  0x96   :  { %566 = vpow2.f32 %v544_v46 }
  0xa0   :  { %v561_v47 = vpop.eup %560 }
  0xa1   :  { %v563_v48 = vpop.eup %562  ;;  %v148_v49 = vadd.f32 1.0, %v561_v47 }
  0xa2   :  { %v565_v50 = vpop.eup %564  ;;  %v149_v51 = vadd.f32 1.0, %v563_v48 }
  0xa3   :  { %v567_v52 = vpop.eup %566  ;;  %568 = vrcp.f32 %v148_v49  ;;  %v411_v53 = vadd.f32 1.0, %v565_v50 }
  0xa4   :  { %570 = vrcp.f32 %v149_v51  ;;  %v412_v54 = vadd.f32 1.0, %v567_v52 }
  0xa5   :  { %572 = vrcp.f32 %v411_v53 }
  0xa6   :  { %574 = vrcp.f32 %v412_v54 }
  0xb0   :  { %v569_v56 = vpop.eup %568 }
  0xb1   :  { %v571_v58 = vpop.eup %570  ;;  %v724_v59 = vmul.f32 %v569_v56, %v140_v39 }
  0xb2   :  { %v573_v61 = vpop.eup %572  ;;  %v728_v62 = vmul.f32 %v571_v58, %v141_v40 }
  0xb3   :  { %v575_v3 = vpop.eup %574  ;;  %v170_v4 = vmul.f32 %v718_v55, %v724_v59  ;;  %v740_v5 = vmul.f32 %v573_v61, %v403_v41  ;;  %v186_v17 = vmul.f32 %v732_v63, %v724_v59  ;;  %v202_v24 = vmul.f32 %v749_v16, %v724_v59 }
  0xb4   :  { %v742_v6 = vmul.f32 %v575_v3, %v404_v42  ;;  %v156_v1 = vadd.f32 %v728_v62, %v724_v59  ;;  %v171_v9 = vmul.f32 %v722_v57, %v728_v62  ;;  %v187_v18 = vmul.f32 %v736_v0, %v728_v62 }
  0xb5   :  { %v422_v21 = vmul.f32 %v740_v5, %v718_v55  ;;  %v203_v25 = vmul.f32 %v756_v19, %v728_v62  ;;  %v427_v26 = vmul.f32 %v740_v5, %v732_v63  ;;  %v432_v31 = vmul.f32 %v740_v5, %v749_v16 }
  0xb6   :  { %157 = vadd.xlane.f32.xlu0 %v156_v1  ;;  %v172_v2 = vadd.f32 %v171_v9, %v170_v4  ;;  %v419_v20 = vadd.f32 %v742_v6, %v740_v5  ;;  %v423_v22 = vmul.f32 %v742_v6, %v722_v57  ;;  %v188_v23 = vadd.f32 %v187_v18, %v186_v17 }
  0xb7   :  { %v428_v28 = vmul.f32 %v742_v6, %v736_v0  ;;  %v204_v29 = vadd.f32 %v203_v25, %v202_v24  ;;  %v433_v32 = vmul.f32 %v742_v6, %v756_v19 }
  0xb8   :  { %173 = vadd.xlane.f32.xlu1 %v172_v2  ;;  %v424_v27 = vadd.f32 %v423_v22, %v422_v21 }
  0xb9   :  { %v429_v30 = vadd.f32 %v428_v28, %v427_v26  ;;  %v434_v33 = vadd.f32 %v433_v32, %v432_v31 }
  0xba   :  { %420 = vadd.xlane.f32.xlu0 %v419_v20 }
  0xbc   :  { %189 = vadd.xlane.f32.xlu1 %v188_v23 }
  0xbe   :  { %425 = vadd.xlane.f32.xlu0 %v424_v27 }
  0xc0   :  { %205 = vadd.xlane.f32.xlu1 %v204_v29 }
  0xc2   :  { %430 = vadd.xlane.f32.xlu0 %v429_v30 }
  0xc6   :  { %435 = vadd.xlane.f32.xlu0 %v434_v33 }
 0x13f   :  { %v158_v34 = vpop.xlane.xlu0 %157 }
 0x141   :  { %v174_v35 = vpop.xlane.xlu1 %173 }
 0x142   :  { %v212_v38 = vsub.f32 %v158_v34, %v174_v35 }
 0x143   :  { %v421_v36 = vpop.xlane.xlu0 %420 }
 0x145   :  { %v190_v37 = vpop.xlane.xlu1 %189 }
 0x146   :  { %v213_v40 = vsub.f32 %v212_v38, %v190_v37 }
 0x147   :  { %v426_v39 = vpop.xlane.xlu0 %425 }
 0x148   :  { %v442_v51 = vsub.f32 %v421_v36, %v426_v39 }
 0x149   :  { %v206_v41 = vpop.xlane.xlu1 %205 }
 0x14a   :  { %v208_v42 = vsub.f32 %v174_v35, %v206_v41  ;;  %v210_v43 = vsub.f32 %v190_v37, %v206_v41  ;;  %v214_v44 = vadd.f32 %v213_v40, %v206_v41  ;;  %v207_v7 = vmul.f32 0.015625, %v206_v41 }
 0x14b   :  { %v431_v48 = vpop.xlane.xlu0 %430 }
 0x14c   :  { %v209_v13 = vmul.f32 0.015625, %v208_v42  ;;  %v211_v49 = vmul.f32 0.015625, %v210_v43  ;;  %v215_v50 = vmul.f32 0.015625, %v214_v44  ;;  %v443_v53 = vsub.f32 %v442_v51, %v431_v48 }
 0x14e   :  { %v227_v10 = vsel %vm779_vm2, %v207_v7, %v209_v13  ;;  %v228_v14 = vsel %vm786_vm3, %v207_v7, %v209_v13  ;;  %v229_v52 = vsel %vm779_vm2, %v211_v49, %v215_v50  ;;  %v230_v8 = vsel %vm786_vm3, %v211_v49, %v215_v50 }
 0x14f   :  { %v242_v11 = vsel %vm793_vm4, %v227_v10, %v229_v52  ;;  %v243_v15 = vsel %vm800_vm5, %v228_v14, %v230_v8  ;;  %v436_v54 = vpop.xlane.xlu0 %435 }
 0x150   :  { %v244_v56 = vsub.f32 %v724_v59, %v242_v11  ;;  %v245_v58 = vsub.f32 %v728_v62, %v243_v15  ;;  %v438_v60 = vsub.f32 %v426_v39, %v436_v54  ;;  %v440_v61 = vsub.f32 %v431_v48, %v436_v54 }
 0x151   :  { %v444_v3 = vadd.f32 %v443_v53, %v436_v54  ;;  %v437_v4 = vmul.f32 0.015625, %v436_v54 }
 0x152   :  { %v439_v1 = vmul.f32 0.015625, %v438_v60  ;;  %v818_v9 = vmul.f32 %v244_v56, %v244_v56  ;;  %v820_v2 = vmul.f32 %v245_v58, %v245_v58  ;;  %v441_v17 = vmul.f32 0.015625, %v440_v61 }
 0x153   :  { %v445_v18 = vmul.f32 0.015625, %v444_v3 }
 0x154   :  { %v446_v20 = vsel %vm779_vm2, %v437_v4, %v439_v1  ;;  %v447_v21 = vsel %vm786_vm3, %v437_v4, %v439_v1  ;;  %v248_v22 = vadd.f32 %v820_v2, %v818_v9  ;;  %v251_v23 = vmul.f32 %v818_v9, %v718_v55 }
 0x155   :  { %v448_v24 = vsel %vm779_vm2, %v441_v17, %v445_v18  ;;  %v449_v25 = vsel %vm786_vm3, %v441_v17, %v445_v18  ;;  %v252_v27 = vmul.f32 %v820_v2, %v722_v57  ;;  %v256_v34 = vmul.f32 %v818_v9, %v732_v63 }
 0x156   :  { %v450_v26 = vsel %vm793_vm4, %v446_v20, %v448_v24  ;;  %v451_v28 = vsel %vm800_vm5, %v447_v21, %v449_v25  ;;  %249 = vadd.xlane.f32.xlu1 %v248_v22  ;;  %v257_v38 = vmul.f32 %v820_v2, %v736_v0  ;;  %v261_v43 = vmul.f32 %v818_v9, %v749_v16 }
 0x157   :  { %v452_v29 = vsub.f32 %v740_v5, %v450_v26  ;;  %v453_v30 = vsub.f32 %v742_v6, %v451_v28  ;;  %v253_v31 = vadd.f32 %v252_v27, %v251_v23 }
 0x158   :  { %v258_v42 = vadd.f32 %v257_v38, %v256_v34 }
 0x159   :  { %254 = vadd.xlane.f32.xlu0 %v253_v31  ;;  %v842_v32 = vmul.f32 %v452_v29, %v452_v29  ;;  %v844_v33 = vmul.f32 %v453_v30, %v453_v30 }
 0x15b   :  { %v456_v35 = vadd.f32 %v844_v33, %v842_v32  ;;  %v459_v36 = vmul.f32 %v842_v32, %v718_v55  ;;  %v460_v37 = vmul.f32 %v844_v33, %v722_v57  ;;  %v464_v40 = vmul.f32 %v842_v32, %v732_v63 }
 0x15c   :  { %v465_v41 = vmul.f32 %v844_v33, %v736_v0  ;;  %v262_v55 = vmul.f32 %v820_v2, %v756_v19  ;;  %v469_v44 = vmul.f32 %v842_v32, %v749_v16  ;;  %v470_v48 = vmul.f32 %v844_v33, %v756_v19 }
 0x15d   :  { %457 = vadd.xlane.f32.xlu1 %v456_v35  ;;  %v461_v39 = vadd.f32 %v460_v37, %v459_v36 }
 0x15e   :  { %v466_v57 = vadd.f32 %v465_v41, %v464_v40  ;;  %v263_v63 = vadd.f32 %v262_v55, %v261_v43  ;;  %v471_v0 = vadd.f32 %v470_v48, %v469_v44 }
 0x15f   :  { %462 = vadd.xlane.f32.xlu0 %v461_v39 }
 0x161   :  { %259 = vadd.xlane.f32.xlu1 %v258_v42 }
 0x163   :  { %467 = vadd.xlane.f32.xlu0 %v466_v57 }
 0x165   :  { %264 = vadd.xlane.f32.xlu1 %v263_v63 }
 0x167   :  { %472 = vadd.xlane.f32.xlu0 %v471_v0 }
 0x1df   :  { %v250_v7 = vpop.xlane.xlu1 %249 }
 0x1e2   :  { %v255_v13 = vpop.xlane.xlu0 %254 }
 0x1e3   :  { %v280_v10 = vsub.f32 %v250_v7, %v255_v13 }
 0x1e6   :  { %v458_v49 = vpop.xlane.xlu1 %457 }
 0x1e8   :  { %v463_v50 = vpop.xlane.xlu0 %462 }
 0x1e9   :  { %v488_v8 = vsub.f32 %v458_v49, %v463_v50 }
 0x1ea   :  { %v260_v51 = vpop.xlane.xlu1 %259 }
 0x1eb   :  { %v281_v52 = vsub.f32 %v280_v10, %v260_v51 }
 0x1ec   :  { %v468_v14 = vpop.xlane.xlu0 %467 }
 0x1ed   :  { %v489_v19 = vsub.f32 %v488_v8, %v468_v14 }
 0x1ee   :  { %v265_v11 = vpop.xlane.xlu1 %264 }
 0x1ef   :  { %v266_v15 = vmul.f32 0.015873017, %v265_v11  ;;  %v270_v16 = vsub.f32 %v255_v13, %v265_v11  ;;  %v275_v53 = vsub.f32 %v260_v51, %v265_v11  ;;  %v282_v54 = vadd.f32 %v281_v52, %v265_v11 }
 0x1f0   :  { %v473_v56 = vpop.xlane.xlu0 %472 }
 0x1f1   :  { %v267_v58 = vadd.f32 0.0001, %v266_v15  ;;  %v271_v60 = vmul.f32 0.015873017, %v270_v16  ;;  %v276_v61 = vmul.f32 0.015873017, %v275_v53  ;;  %v478_v3 = vsub.f32 %v463_v50, %v473_v56 }
 0x1f2   :  { %v283_v4 = vmul.f32 0.015873017, %v282_v54  ;;  %v474_v1 = vmul.f32 0.015873017, %v473_v56  ;;  %v483_v17 = vsub.f32 %v468_v14, %v473_v56  ;;  %v490_v18 = vadd.f32 %v489_v19, %v473_v56 }
 0x1f3   :  { %v268_v20 = vmul.f32 4.0, %v267_v58  ;;  %v272_v21 = vadd.f32 0.0001, %v271_v60  ;;  %v277_v22 = vadd.f32 0.0001, %v276_v61 }
 0x1f4   :  { %v284_v23 = vadd.f32 0.0001, %v283_v4  ;;  %v475_v24 = vadd.f32 0.0001, %v474_v1  ;;  %v479_v25 = vmul.f32 0.015873017, %v478_v3 }
 0x1f5   :  { %576 = vrcp.f32 %v268_v20  ;;  %v273_v27 = vmul.f32 4.0, %v272_v21  ;;  %v278_v26 = vmul.f32 4.0, %v277_v22  ;;  %v484_v28 = vmul.f32 0.015873017, %v483_v17 }
 0x1f6   :  { %v285_v29 = vmul.f32 4.0, %v284_v23  ;;  %v476_v30 = vmul.f32 4.0, %v475_v24  ;;  %v480_v31 = vadd.f32 0.0001, %v479_v25  ;;  %v491_v34 = vmul.f32 0.015873017, %v490_v18 }
 0x1f7   :  { %578 = vrcp.f32 %v273_v27  ;;  %v485_v35 = vadd.f32 0.0001, %v484_v28 }
 0x1f8   :  { %580 = vrcp.f32 %v278_v26  ;;  %v481_v36 = vmul.f32 4.0, %v480_v31  ;;  %v492_v37 = vadd.f32 0.0001, %v491_v34 }
 0x1f9   :  { %582 = vrcp.f32 %v285_v29  ;;  %v486_v38 = vmul.f32 4.0, %v485_v35 }
 0x1fa   :  { %584 = vrcp.f32 %v476_v30  ;;  %v493_v39 = vmul.f32 4.0, %v492_v37 }
 0x1fb   :  { %586 = vrcp.f32 %v481_v36 }
 0x1fc   :  { %588 = vrcp.f32 %v486_v38 }
 0x1fd   :  { %590 = vrcp.f32 %v493_v39 }
 0x202   :  { %v577_v40 = vpop.eup %576 }
 0x204   :  { %v579_v41 = vpop.eup %578 }
 0x205   :  { %v581_v42 = vpop.eup %580  ;;  %v287_v43 = vsel %vm779_vm2, %v577_v40, %v579_v41  ;;  %v288_v55 = vsel %vm786_vm3, %v577_v40, %v579_v41 }
 0x206   :  { %v583_v57 = vpop.eup %582 }
 0x207   :  { %v585_v44 = vpop.eup %584  ;;  %v289_v48 = vsel %vm779_vm2, %v581_v42, %v583_v57  ;;  %v290_v63 = vsel %vm786_vm3, %v581_v42, %v583_v57 }
 0x208   :  { %v587_v0 = vpop.eup %586  ;;  %v291_v7 = vsel %vm793_vm4, %v287_v43, %v289_v48  ;;  %v292_v13 = vsel %vm800_vm5, %v288_v55, %v290_v63 }
 0x209   :  { %v589_v49 = vpop.eup %588  ;;  %v495_v50 = vsel %vm779_vm2, %v585_v44, %v587_v0  ;;  %v496_v51 = vsel %vm786_vm3, %v585_v44, %v587_v0  ;;  %v293_v10 = vmul.f32 %v291_v7, %v818_v9  ;;  %v294_v14 = vmul.f32 %v292_v13, %v820_v2 }
 0x20a   :  { %v591_v52 = vpop.eup %590 }
 0x20b   :  { %v497_v8 = vsel %vm779_vm2, %v589_v49, %v591_v52  ;;  %v498_v11 = vsel %vm786_vm3, %v589_v49, %v591_v52  ;;  %v295_v15 = vadd.f32 0.5, %v293_v10  ;;  %v296_v16 = vadd.f32 0.5, %v294_v14 }
 0x20c   :  { %v499_v53 = vsel %vm793_vm4, %v495_v50, %v497_v8  ;;  %v500_v54 = vsel %vm800_vm5, %v496_v51, %v498_v11 }
 0x20d   :  { %v540_v19 = vmul.f32 -1.442695, %v295_v15  ;;  %v541_v56 = vmul.f32 -1.442695, %v296_v16  ;;  %v501_v9 = vmul.f32 %v499_v53, %v842_v32  ;;  %v502_v2 = vmul.f32 %v500_v54, %v844_v33 }
 0x20f   :  { %592 = vpow2.f32 %v540_v19  ;;  %v503_v45 = vadd.f32 0.5, %v501_v9  ;;  %v504_v58 = vadd.f32 0.5, %v502_v2 }
 0x210   :  { %594 = vpow2.f32 %v541_v56 }
 0x211   :  { %v545_v46 = vmul.f32 -1.442695, %v503_v45  ;;  %v546_v60 = vmul.f32 -1.442695, %v504_v58 }
 0x213   :  { %596 = vpow2.f32 %v545_v46 }
 0x214   :  { %598 = vpow2.f32 %v546_v60 }
 0x21c   :  { %v593_v61 = vpop.eup %592 }
 0x21d   :  { %v595_v47 = vpop.eup %594  ;;  %v303_v3 = vadd.f32 1.0, %v593_v61 }
 0x21e   :  { %v304_v4 = vadd.f32 1.0, %v595_v47 }
 0x21f   :  { %600 = vrcp.f32 %v303_v3 }
 0x220   :  { %v597_v12 = vpop.eup %596  ;;  %602 = vrcp.f32 %v304_v4 }
 0x221   :  { %v599_v1 = vpop.eup %598  ;;  %v511_v17 = vadd.f32 1.0, %v597_v12 }
 0x222   :  { %v512_v32 = vadd.f32 1.0, %v599_v1 }
 0x223   :  { %604 = vrcp.f32 %v511_v17 }
 0x224   :  { %606 = vrcp.f32 %v512_v32 }
 0x22c   :  { %v601_v33 = vpop.eup %600 }
 0x22d   :  { %v603_v18 = vpop.eup %602  ;;  %v309_v20 = vmul.f32 %v601_v33, %v724_v59 }
 0x22e   :  { %v310_v21 = vmul.f32 %v603_v18, %v728_v62 }
 0x22f   :  { %311 = vst [vmem:[#allocation2] sm:$0xff] %v309_v20 }
 0x230   :  { %v605_v22 = vpop.eup %604  ;;  %312 = vst [vmem:[#allocation2 + $0x8] sm:$0xff] %v310_v21 }
 0x231   :  { %v607_v23 = vpop.eup %606  ;;  %v517_v24 = vmul.f32 %v605_v22, %v740_v5 }
 0x232   :  { %v518_v25 = vmul.f32 %v607_v23, %v742_v6 }
 0x233   :  { %520 = vst [vmem:[#allocation2 + $0x10] sm:$0xff] %v517_v24 }
 0x234   :  { %521 = vst [vmem:[#allocation2 + $0x18] sm:$0xff] %v518_v25 }
 0x235   :  { %619 = shalt.err (!%p616_p4)
}
 0x236   :  { %s635_s26 = smov 256   ;;  %s636_s27 = smov 16  }
 0x237   :  { %533 = dma.vmem_to_hbm [thread:$0]  %s528_s2, 512, %s908_s5, [#allocation3], %s635_s26, %s635_s26, %s636_s27  }
 0x238   :  { %628 = dma.done.wait [#allocation3], 512  }
 0x239   :  { %629 = vsyncadd [#allocation3], 4294966784 }
 0x23a   :  { %537 = vsyncpa [#allocation3], 1 }

// kernel: tpu_custom_call.1
= control target key start
LH: loop header
LB: loop body
LE: loop exit
PB: predicated region body
PF: predicated region fallthrough
CT: control target
= control target key end

     0   :  { %v37_v0 = vlaneseq  ;;  %v630_v3 = vmov 0   ;;  %v631_v5 = vmov 2   ;;  %s903_s0 = inlined_call_operand.vmem [shape: bf16[2,4,256], index: 0, kind: input, shape index: {}]   ;;  %s904_s1 = inlined_call_operand.vmem [shape: bf16[8,4], index: 1, kind: input, shape index: {}]   ;;  %s905_s2 = inlined_call_operand.vmem [shape: f32[8,1], index: 2, kind: input, shape index: {}]   ;;  %s906_s3 = inlined_call_operand.vmem [shape: f32[1,256], index: 3, kind: input, shape index: {}]   ;;  %s907_s4 = inlined_call_operand.vmem [shape: f32[1,256], index: 4, kind: input, shape index: {}]   ;;  %s908_s5 = inlined_call_operand.hbm [shape: f32[2,8,256], index: 5, kind: output, shape index: {}]  }
   0x1   :  { %v670_v1 = vld [vmem:[%s906_s3] sm:$0x3]  ;;  %554 = vset.pattern.permute.xlu0 %v630_v3  ;;  %556 = vset.pattern.permute.xlu1 %v631_v5 }
   0x2   :  { %v675_v2 = vld [vmem:[%s907_s4] sm:$0x3]  ;;  %vm24_vm0 = vcmp.gt.f32.partialorder %v670_v1, 0.5  ;;  %v38_v6 = vshrl.u32 %v37_v0, 7 }
   0x3   :  { %vm25_vm1 = vcmp.gt.f32.partialorder %v675_v2, 0.5  ;;  %v27_v4 = vld [vmem:[%s904_s1] sm:$0xf]  ;;  %v684_v8 = vsel %vm24_vm0, 1, %v630_v3 }
   0x4   :  { %v682_v7 = vsel %vm25_vm1, 1, %v630_v3  ;;  %v28_v9 = vunpack.c.l.bf16 %v27_v4 }
   0x5   :  { %10 = vsyncpa [#allocation3], 0  ;;  %v686_v10 = vsub.s32 0, %v38_v6  ;;  %v688_v11 = vsub.s32 1, %v38_v6  ;;  %v632_v16 = vmov 1   ;;  %v633_v17 = vmov 3  }
   0x6   :  { %33 = vperm.xlu0 %554, %v28_v9   ;;  %84 = vperm.xlu1 %556, %v28_v9   ;;  %v26_v18 = vld [vmem:[%s905_s2] sm:$0xff]  ;;  %v43_v21 = vsub.s32 4, %v38_v6  ;;  %v89_v23 = vsub.s32 2, %v38_v6  ;;  %v93_v24 = vsub.s32 6, %v38_v6  ;;  %v67_v25 = vsub.s32 5, %v38_v6 }
   0x7   :  { %v220_v12 = vrot.slane %v682_v7, %v686_v10  ;;  %v224_v13 = vrot.slane %v682_v7, %v688_v11  ;;  %v235_v14 = vrot.slane %v684_v8, %v686_v10  ;;  %v239_v15 = vrot.slane %v684_v8, %v688_v11  ;;  %v29_v19 = vld [vmem:[%s903_s0] sm:$0xff]   ;;  %s634_s0 = smov [#allocation2]  }
   0x8   :  { %v30_v20 = vunpack.c.l.bf16 %v29_v19  ;;  %v315_v22 = vunpack.c.h.bf16 %v29_v19  ;;  %v115_v26 = vsub.s32 3, %v38_v6  ;;  %v119_v27 = vsub.s32 7, %v38_v6  ;;  %s527_s2 = sshll.u32 %s634_s0, 4  ;;  %s528_s2 = int_to_ptr.vmem [resolvable:$true] %s527_s2 }
   0x9   :  { %vm779_vm2 = vcmp.eq.s32.totalorder %v220_v12, 1  ;;  %vm786_vm3 = vcmp.eq.s32.totalorder %v224_v13, 1  ;;  %vm793_vm4 = vcmp.eq.s32.totalorder %v235_v14, 1  ;;  %vm800_vm5 = vcmp.eq.s32.totalorder %v239_v15, 1  ;;  %s608_s25 = scalar_lea.vmem %s528_s2, 512  ;;  %p613_p1 = scmp.lt.s32.totalorder %s528_s2, %s528_s2 }
   0xa   :  { %555 = vset.pattern.permute.xlu0 %v632_v16  ;;  %557 = vset.pattern.permute.xlu1 %v633_v17  ;;  %v40_v28 = vrot.slane %v30_v20, %v686_v10  ;;  %v44_v29 = vrot.slane %v30_v20, %v43_v21  ;;  %v320_v30 = vrot.slane %v315_v22, %v686_v10  ;;  %p609_p0 = scmp.ne.s32.totalorder %s528_s2, %s608_s25  ;;  %p614_p2 = scmp.lt.s32.totalorder %s608_s25, %s608_s25 }
   0xb   :  { %58 = vperm.xlu0 %555, %v28_v9   ;;  %110 = vperm.xlu1 %557, %v28_v9   ;;  %v324_v31 = vrot.slane %v315_v22, %v43_v21  ;;  %v90_v32 = vrot.slane %v30_v20, %v89_v23  ;;  %v94_v33 = vrot.slane %v30_v20, %v93_v24 }
   0xc   :  { %v362_v34 = vrot.slane %v315_v22, %v89_v23  ;;  %v366_v35 = vrot.slane %v315_v22, %v93_v24  ;;  %v64_v36 = vrot.slane %v30_v20, %v688_v11  ;;  %v68_v37 = vrot.slane %v30_v20, %v67_v25  ;;  %p615_p3 = por %p614_p2, %p613_p1 }
   0xd   :  { %v340_v38 = vrot.slane %v315_v22, %v688_v11  ;;  %v344_v39 = vrot.slane %v315_v22, %v67_v25  ;;  %v116_v40 = vrot.slane %v30_v20, %v115_v26  ;;  %v120_v41 = vrot.slane %v30_v20, %v119_v27 }
   0xe   :  { %v384_v42 = vrot.slane %v315_v22, %v115_v26  ;;  %v388_v43 = vrot.slane %v315_v22, %v119_v27  ;;  %v50_v44 = vrot.slane %v40_v28, %v686_v10  ;;  %v54_v45 = vrot.slane %v44_v29, %v686_v10  ;;  %p616_p4 = pnand %p615_p3, %p609_p0 }
   0xf   :  { %558 = vset.pattern.permute.xlu1 %v630_v3  ;;  %559 = vset.pattern.permute.xlu0 %v630_v3  ;;  %v330_v46 = vrot.slane %v320_v30, %v686_v10  ;;  %v334_v47 = vrot.slane %v324_v31, %v686_v10  ;;  %v100_v50 = vrot.slane %v90_v32, %v89_v23 }
  0x10   :  { %137 = vperm.xlu1 %558, %v26_v18   ;;  %v104_v51 = vrot.slane %v94_v33, %v89_v23  ;;  %v372_v52 = vrot.slane %v362_v34, %v89_v23  ;;  %v376_v53 = vrot.slane %v366_v35, %v89_v23  ;;  %v74_v54 = vrot.slane %v64_v36, %v688_v11 }
  0x11   :  { %v78_v55 = vrot.slane %v68_v37, %v688_v11  ;;  %v350_v56 = vrot.slane %v340_v38, %v688_v11  ;;  %v354_v57 = vrot.slane %v344_v39, %v688_v11  ;;  %v126_v58 = vrot.slane %v116_v40, %v115_v26 }
  0x12   :  { %v130_v59 = vrot.slane %v120_v41, %v115_v26  ;;  %v394_v60 = vrot.slane %v384_v42, %v115_v26  ;;  %v398_v61 = vrot.slane %v388_v43, %v115_v26 }
  0x81   :  { %v34_v48 = vpop.permute.xlu0 %33  ;;  %v85_v49 = vpop.permute.xlu1 %84 }
  0x82   :  { %v55_v62 = vmul.f32 %v50_v44, %v34_v48  ;;  %v56_v63 = vmul.f32 %v54_v45, %v34_v48  ;;  %v335_v0 = vmul.f32 %v330_v46, %v34_v48  ;;  %v336_v3 = vmul.f32 %v334_v47, %v34_v48 }
  0x83   :  { %v105_v4 = vmul.f32 %v100_v50, %v85_v49  ;;  %v106_v5 = vmul.f32 %v104_v51, %v85_v49  ;;  %v377_v6 = vmul.f32 %v372_v52, %v85_v49  ;;  %v378_v9 = vmul.f32 %v376_v53, %v85_v49 }
  0x86   :  { %v59_v16 = vpop.permute.xlu0 %58  ;;  %v111_v17 = vpop.permute.xlu1 %110 }
  0x87   :  { %v79_v18 = vmul.f32 %v74_v54, %v59_v16  ;;  %v80_v19 = vmul.f32 %v78_v55, %v59_v16  ;;  %v355_v20 = vmul.f32 %v350_v56, %v59_v16  ;;  %v356_v21 = vmul.f32 %v354_v57, %v59_v16 }
  0x88   :  { %v131_v22 = vmul.f32 %v126_v58, %v111_v17  ;;  %v132_v23 = vmul.f32 %v130_v59, %v111_v17  ;;  %v399_v24 = vmul.f32 %v394_v60, %v111_v17  ;;  %v400_v25 = vmul.f32 %v398_v61, %v111_v17 }
  0x89   :  { %v81_v27 = vadd.f32 %v79_v18, %v55_v62  ;;  %v82_v26 = vadd.f32 %v80_v19, %v56_v63  ;;  %v357_v28 = vadd.f32 %v355_v20, %v335_v0  ;;  %v358_v29 = vadd.f32 %v356_v21, %v336_v3 }
  0x8a   :  { %v718_v55 = vrot.slane %v670_v1, %v686_v10  ;;  %v722_v57 = vrot.slane %v670_v1, %v688_v11  ;;  %v23_v60 = vmul.f32 %v675_v2, %v670_v1  ;;  %v732_v63 = vrot.slane %v675_v2, %v686_v10 }
  0x8b   :  { %v107_v30 = vadd.f32 %v105_v4, %v81_v27  ;;  %v108_v31 = vadd.f32 %v106_v5, %v82_v26  ;;  %v379_v32 = vadd.f32 %v377_v6, %v357_v28  ;;  %v380_v33 = vadd.f32 %v378_v9, %v358_v29  ;;  %v138_v34 = vpop.permute.xlu1 %137 }
  0x8c   :  { %v736_v0 = vrot.slane %v675_v2, %v688_v11  ;;  %v749_v16 = vrot.slane %v23_v60, %v686_v10  ;;  %v756_v19 = vrot.slane %v23_v60, %v688_v11 }
  0x8d   :  { %v133_v35 = vadd.f32 %v131_v22, %v107_v30  ;;  %v134_v36 = vadd.f32 %v132_v23, %v108_v31  ;;  %v401_v37 = vadd.f32 %v399_v24, %v379_v32  ;;  %v402_v38 = vadd.f32 %v400_v25, %v380_v33 }
  0x8f   :  { %v140_v39 = vadd.f32 %v138_v34, %v133_v35  ;;  %v141_v40 = vadd.f32 %v138_v34, %v134_v36  ;;  %v403_v41 = vadd.f32 %v401_v37, %v138_v34  ;;  %v404_v42 = vadd.f32 %v402_v38, %v138_v34 }
  0x91   :  { %v538_v43 = vmul.f32 -1.442695, %v140_v39  ;;  %v539_v44 = vmul.f32 -1.442695, %v141_v40  ;;  %v543_v45 = vmul.f32 -1.442695, %v403_v41 }
  0x92   :  { %v544_v46 = vmul.f32 -1.442695, %v404_v42 }
  0x93   :  { %560 = vpow2.f32 %v538_v43 }
  0x94   :  { %562 = vpow2.f32 %v539_v44 }
  0x95   :  { %564 = vpow2.f32 %v543_v45 }
  0x96   :  { %566 = vpow2.f32 %v544_v46 }
  0xa0   :  { %v561_v47 = vpop.eup %560 }
  0xa1   :  { %v563_v48 = vpop.eup %562  ;;  %v148_v49 = vadd.f32 1.0, %v561_v47 }
  0xa2   :  { %v565_v50 = vpop.eup %564  ;;  %v149_v51 = vadd.f32 1.0, %v563_v48 }
  0xa3   :  { %v567_v52 = vpop.eup %566  ;;  %568 = vrcp.f32 %v148_v49  ;;  %v411_v53 = vadd.f32 1.0, %v565_v50 }
  0xa4   :  { %570 = vrcp.f32 %v149_v51  ;;  %v412_v54 = vadd.f32 1.0, %v567_v52 }
  0xa5   :  { %572 = vrcp.f32 %v411_v53 }
  0xa6   :  { %574 = vrcp.f32 %v412_v54 }
  0xb0   :  { %v569_v56 = vpop.eup %568 }
  0xb1   :  { %v571_v58 = vpop.eup %570  ;;  %v724_v59 = vmul.f32 %v569_v56, %v140_v39 }
  0xb2   :  { %v573_v61 = vpop.eup %572  ;;  %v728_v62 = vmul.f32 %v571_v58, %v141_v40 }
  0xb3   :  { %v575_v3 = vpop.eup %574  ;;  %v170_v4 = vmul.f32 %v718_v55, %v724_v59  ;;  %v740_v5 = vmul.f32 %v573_v61, %v403_v41  ;;  %v186_v17 = vmul.f32 %v732_v63, %v724_v59  ;;  %v202_v24 = vmul.f32 %v749_v16, %v724_v59 }
  0xb4   :  { %v742_v6 = vmul.f32 %v575_v3, %v404_v42  ;;  %v156_v1 = vadd.f32 %v728_v62, %v724_v59  ;;  %v171_v9 = vmul.f32 %v722_v57, %v728_v62  ;;  %v187_v18 = vmul.f32 %v736_v0, %v728_v62 }
  0xb5   :  { %v422_v21 = vmul.f32 %v740_v5, %v718_v55  ;;  %v203_v25 = vmul.f32 %v756_v19, %v728_v62  ;;  %v427_v26 = vmul.f32 %v740_v5, %v732_v63  ;;  %v432_v31 = vmul.f32 %v740_v5, %v749_v16 }
  0xb6   :  { %157 = vadd.xlane.f32.xlu0 %v156_v1  ;;  %v172_v2 = vadd.f32 %v171_v9, %v170_v4  ;;  %v419_v20 = vadd.f32 %v742_v6, %v740_v5  ;;  %v423_v22 = vmul.f32 %v742_v6, %v722_v57  ;;  %v188_v23 = vadd.f32 %v187_v18, %v186_v17 }
  0xb7   :  { %v428_v28 = vmul.f32 %v742_v6, %v736_v0  ;;  %v204_v29 = vadd.f32 %v203_v25, %v202_v24  ;;  %v433_v32 = vmul.f32 %v742_v6, %v756_v19 }
  0xb8   :  { %173 = vadd.xlane.f32.xlu1 %v172_v2  ;;  %v424_v27 = vadd.f32 %v423_v22, %v422_v21 }
  0xb9   :  { %v429_v30 = vadd.f32 %v428_v28, %v427_v26  ;;  %v434_v33 = vadd.f32 %v433_v32, %v432_v31 }
  0xba   :  { %420 = vadd.xlane.f32.xlu0 %v419_v20 }
  0xbc   :  { %189 = vadd.xlane.f32.xlu1 %v188_v23 }
  0xbe   :  { %425 = vadd.xlane.f32.xlu0 %v424_v27 }
  0xc0   :  { %205 = vadd.xlane.f32.xlu1 %v204_v29 }
  0xc2   :  { %430 = vadd.xlane.f32.xlu0 %v429_v30 }
  0xc6   :  { %435 = vadd.xlane.f32.xlu0 %v434_v33 }
 0x13f   :  { %v158_v34 = vpop.xlane.xlu0 %157 }
 0x141   :  { %v174_v35 = vpop.xlane.xlu1 %173 }
 0x142   :  { %v212_v38 = vsub.f32 %v158_v34, %v174_v35 }
 0x143   :  { %v421_v36 = vpop.xlane.xlu0 %420 }
 0x145   :  { %v190_v37 = vpop.xlane.xlu1 %189 }
 0x146   :  { %v213_v40 = vsub.f32 %v212_v38, %v190_v37 }
 0x147   :  { %v426_v39 = vpop.xlane.xlu0 %425 }
 0x148   :  { %v442_v51 = vsub.f32 %v421_v36, %v426_v39 }
 0x149   :  { %v206_v41 = vpop.xlane.xlu1 %205 }
 0x14a   :  { %v208_v42 = vsub.f32 %v174_v35, %v206_v41  ;;  %v210_v43 = vsub.f32 %v190_v37, %v206_v41  ;;  %v214_v44 = vadd.f32 %v213_v40, %v206_v41  ;;  %v207_v7 = vmul.f32 0.015625, %v206_v41 }
 0x14b   :  { %v431_v48 = vpop.xlane.xlu0 %430 }
 0x14c   :  { %v209_v13 = vmul.f32 0.015625, %v208_v42  ;;  %v211_v49 = vmul.f32 0.015625, %v210_v43  ;;  %v215_v50 = vmul.f32 0.015625, %v214_v44  ;;  %v443_v53 = vsub.f32 %v442_v51, %v431_v48 }
 0x14e   :  { %v227_v10 = vsel %vm779_vm2, %v207_v7, %v209_v13  ;;  %v228_v14 = vsel %vm786_vm3, %v207_v7, %v209_v13  ;;  %v229_v52 = vsel %vm779_vm2, %v211_v49, %v215_v50  ;;  %v230_v8 = vsel %vm786_vm3, %v211_v49, %v215_v50 }
 0x14f   :  { %v242_v11 = vsel %vm793_vm4, %v227_v10, %v229_v52  ;;  %v243_v15 = vsel %vm800_vm5, %v228_v14, %v230_v8  ;;  %v436_v54 = vpop.xlane.xlu0 %435 }
 0x150   :  { %v244_v56 = vsub.f32 %v724_v59, %v242_v11  ;;  %v245_v58 = vsub.f32 %v728_v62, %v243_v15  ;;  %v438_v60 = vsub.f32 %v426_v39, %v436_v54  ;;  %v440_v61 = vsub.f32 %v431_v48, %v436_v54 }
 0x151   :  { %v444_v3 = vadd.f32 %v443_v53, %v436_v54  ;;  %v437_v4 = vmul.f32 0.015625, %v436_v54 }
 0x152   :  { %v439_v1 = vmul.f32 0.015625, %v438_v60  ;;  %v818_v9 = vmul.f32 %v244_v56, %v244_v56  ;;  %v820_v2 = vmul.f32 %v245_v58, %v245_v58  ;;  %v441_v17 = vmul.f32 0.015625, %v440_v61 }
 0x153   :  { %v445_v18 = vmul.f32 0.015625, %v444_v3 }
 0x154   :  { %v446_v20 = vsel %vm779_vm2, %v437_v4, %v439_v1  ;;  %v447_v21 = vsel %vm786_vm3, %v437_v4, %v439_v1  ;;  %v248_v22 = vadd.f32 %v820_v2, %v818_v9  ;;  %v251_v23 = vmul.f32 %v818_v9, %v718_v55 }
 0x155   :  { %v448_v24 = vsel %vm779_vm2, %v441_v17, %v445_v18  ;;  %v449_v25 = vsel %vm786_vm3, %v441_v17, %v445_v18  ;;  %v252_v27 = vmul.f32 %v820_v2, %v722_v57  ;;  %v256_v34 = vmul.f32 %v818_v9, %v732_v63 }
 0x156   :  { %v450_v26 = vsel %vm793_vm4, %v446_v20, %v448_v24  ;;  %v451_v28 = vsel %vm800_vm5, %v447_v21, %v449_v25  ;;  %249 = vadd.xlane.f32.xlu1 %v248_v22  ;;  %v257_v38 = vmul.f32 %v820_v2, %v736_v0  ;;  %v261_v43 = vmul.f32 %v818_v9, %v749_v16 }
 0x157   :  { %v452_v29 = vsub.f32 %v740_v5, %v450_v26  ;;  %v453_v30 = vsub.f32 %v742_v6, %v451_v28  ;;  %v253_v31 = vadd.f32 %v252_v27, %v251_v23 }
 0x158   :  { %v258_v42 = vadd.f32 %v257_v38, %v256_v34 }
 0x159   :  { %254 = vadd.xlane.f32.xlu0 %v253_v31  ;;  %v842_v32 = vmul.f32 %v452_v29, %v452_v29  ;;  %v844_v33 = vmul.f32 %v453_v30, %v453_v30 }
 0x15b   :  { %v456_v35 = vadd.f32 %v844_v33, %v842_v32  ;;  %v459_v36 = vmul.f32 %v842_v32, %v718_v55  ;;  %v460_v37 = vmul.f32 %v844_v33, %v722_v57  ;;  %v464_v40 = vmul.f32 %v842_v32, %v732_v63 }
 0x15c   :  { %v465_v41 = vmul.f32 %v844_v33, %v736_v0  ;;  %v262_v55 = vmul.f32 %v820_v2, %v756_v19  ;;  %v469_v44 = vmul.f32 %v842_v32, %v749_v16  ;;  %v470_v48 = vmul.f32 %v844_v33, %v756_v19 }
 0x15d   :  { %457 = vadd.xlane.f32.xlu1 %v456_v35  ;;  %v461_v39 = vadd.f32 %v460_v37, %v459_v36 }
 0x15e   :  { %v466_v57 = vadd.f32 %v465_v41, %v464_v40  ;;  %v263_v63 = vadd.f32 %v262_v55, %v261_v43  ;;  %v471_v0 = vadd.f32 %v470_v48, %v469_v44 }
 0x15f   :  { %462 = vadd.xlane.f32.xlu0 %v461_v39 }
 0x161   :  { %259 = vadd.xlane.f32.xlu1 %v258_v42 }
 0x163   :  { %467 = vadd.xlane.f32.xlu0 %v466_v57 }
 0x165   :  { %264 = vadd.xlane.f32.xlu1 %v263_v63 }
 0x167   :  { %472 = vadd.xlane.f32.xlu0 %v471_v0 }
 0x1df   :  { %v250_v7 = vpop.xlane.xlu1 %249 }
 0x1e2   :  { %v255_v13 = vpop.xlane.xlu0 %254 }
 0x1e3   :  { %v280_v10 = vsub.f32 %v250_v7, %v255_v13 }
 0x1e6   :  { %v458_v49 = vpop.xlane.xlu1 %457 }
 0x1e8   :  { %v463_v50 = vpop.xlane.xlu0 %462 }
 0x1e9   :  { %v488_v8 = vsub.f32 %v458_v49, %v463_v50 }
 0x1ea   :  { %v260_v51 = vpop.xlane.xlu1 %259 }
 0x1eb   :  { %v281_v52 = vsub.f32 %v280_v10, %v260_v51 }
 0x1ec   :  { %v468_v14 = vpop.xlane.xlu0 %467 }
 0x1ed   :  { %v489_v19 = vsub.f32 %v488_v8, %v468_v14 }
 0x1ee   :  { %v265_v11 = vpop.xlane.xlu1 %264 }
 0x1ef   :  { %v266_v15 = vmul.f32 0.015873017, %v265_v11  ;;  %v270_v16 = vsub.f32 %v255_v13, %v265_v11  ;;  %v275_v53 = vsub.f32 %v260_v51, %v265_v11  ;;  %v282_v54 = vadd.f32 %v281_v52, %v265_v11 }
 0x1f0   :  { %v473_v56 = vpop.xlane.xlu0 %472 }
 0x1f1   :  { %v267_v58 = vadd.f32 0.0001, %v266_v15  ;;  %v271_v60 = vmul.f32 0.015873017, %v270_v16  ;;  %v276_v61 = vmul.f32 0.015873017, %v275_v53  ;;  %v478_v3 = vsub.f32 %v463_v50, %v473_v56 }
 0x1f2   :  { %v283_v4 = vmul.f32 0.015873017, %v282_v54  ;;  %v474_v1 = vmul.f32 0.015873017, %v473_v56  ;;  %v483_v17 = vsub.f32 %v468_v14, %v473_v56  ;;  %v490_v18 = vadd.f32 %v489_v19, %v473_v56 }
 0x1f3   :  { %v268_v20 = vmul.f32 4.0, %v267_v58  ;;  %v272_v21 = vadd.f32 0.0001, %v271_v60  ;;  %v277_v22 = vadd.f32 0.0001, %v276_v61 }
 0x1f4   :  { %v284_v23 = vadd.f32 0.0001, %v283_v4  ;;  %v475_v24 = vadd.f32 0.0001, %v474_v1  ;;  %v479_v25 = vmul.f32 0.015873017, %v478_v3 }
 0x1f5   :  { %576 = vrcp.f32 %v268_v20  ;;  %v273_v27 = vmul.f32 4.0, %v272_v21  ;;  %v278_v26 = vmul.f32 4.0, %v277_v22  ;;  %v484_v28 = vmul.f32 0.015873017, %v483_v17 }
 0x1f6   :  { %v285_v29 = vmul.f32 4.0, %v284_v23  ;;  %v476_v30 = vmul.f32 4.0, %v475_v24  ;;  %v480_v31 = vadd.f32 0.0001, %v479_v25  ;;  %v491_v34 = vmul.f32 0.015873017, %v490_v18 }
 0x1f7   :  { %578 = vrcp.f32 %v273_v27  ;;  %v485_v35 = vadd.f32 0.0001, %v484_v28 }
 0x1f8   :  { %580 = vrcp.f32 %v278_v26  ;;  %v481_v36 = vmul.f32 4.0, %v480_v31  ;;  %v492_v37 = vadd.f32 0.0001, %v491_v34 }
 0x1f9   :  { %582 = vrcp.f32 %v285_v29  ;;  %v486_v38 = vmul.f32 4.0, %v485_v35 }
 0x1fa   :  { %584 = vrcp.f32 %v476_v30  ;;  %v493_v39 = vmul.f32 4.0, %v492_v37 }
 0x1fb   :  { %586 = vrcp.f32 %v481_v36 }
 0x1fc   :  { %588 = vrcp.f32 %v486_v38 }
 0x1fd   :  { %590 = vrcp.f32 %v493_v39 }
 0x202   :  { %v577_v40 = vpop.eup %576 }
 0x204   :  { %v579_v41 = vpop.eup %578 }
 0x205   :  { %v581_v42 = vpop.eup %580  ;;  %v287_v43 = vsel %vm779_vm2, %v577_v40, %v579_v41  ;;  %v288_v55 = vsel %vm786_vm3, %v577_v40, %v579_v41 }
 0x206   :  { %v583_v57 = vpop.eup %582 }
 0x207   :  { %v585_v44 = vpop.eup %584  ;;  %v289_v48 = vsel %vm779_vm2, %v581_v42, %v583_v57  ;;  %v290_v63 = vsel %vm786_vm3, %v581_v42, %v583_v57 }
 0x208   :  { %v587_v0 = vpop.eup %586  ;;  %v291_v7 = vsel %vm793_vm4, %v287_v43, %v289_v48  ;;  %v292_v13 = vsel %vm800_vm5, %v288_v55, %v290_v63 }
 0x209   :  { %v589_v49 = vpop.eup %588  ;;  %v495_v50 = vsel %vm779_vm2, %v585_v44, %v587_v0  ;;  %v496_v51 = vsel %vm786_vm3, %v585_v44, %v587_v0  ;;  %v293_v10 = vmul.f32 %v291_v7, %v818_v9  ;;  %v294_v14 = vmul.f32 %v292_v13, %v820_v2 }
 0x20a   :  { %v591_v52 = vpop.eup %590 }
 0x20b   :  { %v497_v8 = vsel %vm779_vm2, %v589_v49, %v591_v52  ;;  %v498_v11 = vsel %vm786_vm3, %v589_v49, %v591_v52  ;;  %v295_v15 = vadd.f32 0.5, %v293_v10  ;;  %v296_v16 = vadd.f32 0.5, %v294_v14 }
 0x20c   :  { %v499_v53 = vsel %vm793_vm4, %v495_v50, %v497_v8  ;;  %v500_v54 = vsel %vm800_vm5, %v496_v51, %v498_v11 }
 0x20d   :  { %v540_v19 = vmul.f32 -1.442695, %v295_v15  ;;  %v541_v56 = vmul.f32 -1.442695, %v296_v16  ;;  %v501_v9 = vmul.f32 %v499_v53, %v842_v32  ;;  %v502_v2 = vmul.f32 %v500_v54, %v844_v33 }
 0x20f   :  { %592 = vpow2.f32 %v540_v19  ;;  %v503_v45 = vadd.f32 0.5, %v501_v9  ;;  %v504_v58 = vadd.f32 0.5, %v502_v2 }
 0x210   :  { %594 = vpow2.f32 %v541_v56 }
 0x211   :  { %v545_v46 = vmul.f32 -1.442695, %v503_v45  ;;  %v546_v60 = vmul.f32 -1.442695, %v504_v58 }
 0x213   :  { %596 = vpow2.f32 %v545_v46 }
 0x214   :  { %598 = vpow2.f32 %v546_v60 }
 0x21c   :  { %v593_v61 = vpop.eup %592 }
 0x21d   :  { %v595_v47 = vpop.eup %594  ;;  %v303_v3 = vadd.f32 1.0, %v593_v61 }
 0x21e   :  { %v304_v4 = vadd.f32 1.0, %v595_v47 }
 0x21f   :  { %600 = vrcp.f32 %v303_v3 }
 0x220   :  { %v597_v12 = vpop.eup %596  ;;  %602 = vrcp.f32 %v304_v4 }
 0x221   :  { %v599_v1 = vpop.eup %598  ;;  %v511_v17 = vadd.f32 1.0, %v597_v12 }
 0x222   :  { %v512_v32 = vadd.f32 1.0, %v599_v1 }
 0x223   :  { %604 = vrcp.f32 %v511_v17 }
 0x224   :  { %606 = vrcp.f32 %v512_v32 }
 0x22c   :  { %v601_v33 = vpop.eup %600 }
 0x22d   :  { %v603_v18 = vpop.eup %602  ;;  %v309_v20 = vmul.f32 %v601_v33, %v724_v59 }
 0x22e   :  { %v310_v21 = vmul.f32 %v603_v18, %v728_v62 }
 0x22f   :  { %311 = vst [vmem:[#allocation2] sm:$0xff] %v309_v20 }
 0x230   :  { %v605_v22 = vpop.eup %604  ;;  %312 = vst [vmem:[#allocation2 + $0x8] sm:$0xff] %v310_v21 }
 0x231   :  { %v607_v23 = vpop.eup %606  ;;  %v517_v24 = vmul.f32 %v605_v22, %v740_v5 }
 0x232   :  { %v518_v25 = vmul.f32 %v607_v23, %v742_v6 }
 0x233   :  { %520 = vst [vmem:[#allocation2 + $0x10] sm:$0xff] %v517_v24 }
 0x234   :  { %521 = vst [vmem:[#allocation2 + $0x18] sm:$0xff] %v518_v25 }
 0x235   :  { %619 = shalt.err (!%p616_p4)
}
 0x236   :  { %s635_s26 = smov 256   ;;  %s636_s27 = smov 16  }
 0x237   :  { %533 = dma.vmem_to_hbm [thread:$0]  %s528_s2, 512, %s908_s5, [#allocation3], %s635_s26, %s635_s26, %s636_s27  }
 0x238   :  { %628 = dma.done.wait [#allocation3], 512  }
 0x239   :  { %629 = vsyncadd [#allocation3], 4294966784 }
 0x23a   :  { %537 = vsyncpa [#allocation3], 1 }

</bundles_post_ra>
